<compile_context>
chip_gen: v7x
topology: tpu7x:2x2x1
jax: 0.10.0
libtpu: 0.0.40
codegen_flags: <defaults>
</compile_context>

<pallas_src>
import functools
import math

import jax
import jax.numpy as jnp
from jax.experimental import pallas as pl
from jax.experimental.pallas import tpu as pltpu

_BIG = 1e30  # sentinel; removed by the always-present boundary fold


# ----------------------------------------------------------------------------
# Per-generation kernel configuration
# ----------------------------------------------------------------------------
def _tpu_defaults():
    kind = ""
    try:
        kind = jax.devices()[0].device_kind.lower()
    except Exception:
        pass
    old_gen = any(t in kind for t in ("v2", "v3", "v4", "v5"))  # no bf16 VALU
    vmem_cap = None
    try:
        vmem_cap = int(getattr(pltpu.get_tpu_info(), "vmem_capacity_bytes"))
    except Exception:
        vmem_cap = None
    if vmem_cap is None:
        vmem_cap = 128 * 1024 * 1024 if old_gen else 64 * 1024 * 1024
    small_vmem = vmem_cap <= 64 * 1024 * 1024  # v7x
    return dict(
        minmax_dtype=jnp.float32 if old_gen else jnp.bfloat16,
        vmem_limit_bytes=int(min((vmem_cap * 3) // 4, 96 * 1024 * 1024)),
        tail_tile=128 if small_vmem else 256,
        head_chunk=512,
    )


# ----------------------------------------------------------------------------
# Pallas kernel: one GeneralizedRelationalConv layer
# grid = (batch, tail_tile, head_chunk, relation); the last two axes reduce
# into f32 VMEM scratch accumulators (sum, sum_sq, max, min).
# ----------------------------------------------------------------------------
def relconv_kernel(xh_ref, xt_ref, rel_ref, at_ref, bnd_ref, pna_ref,
                   wx_ref, wp_ref, b_ref, o_ref,
                   s_acc, s2_acc, mx_acc, mn_acc,
                   *, sub, minmax_dtype):
    h = pl.program_id(2)
    r = pl.program_id(3)
    nh = pl.num_programs(2)
    nr = pl.num_programs(3)
    is_first = jnp.logical_and(h == 0, r == 0)
    is_last = jnp.logical_and(h == nh - 1, r == nr - 1)

    T, D = s_acc.shape
    HC = at_ref.shape[2]

    @pl.when(is_first)
    def _():
        s_acc[...] = jnp.zeros_like(s_acc)
        s2_acc[...] = jnp.zeros_like(s2_acc)
        mx_acc[...] = jnp.full_like(mx_acc, -_BIG)
        mn_acc[...] = jnp.full_like(mn_acc, _BIG)

    a = at_ref[0]                                 # (T, HC)  bf16 edge counts
    x_h = xh_ref[0]                               # (HC, D)  f32 head features
    rel_r = rel_ref[0, 0]                         # (1, D)   f32 relation embed

    # distmult messages for this (relation, head-chunk) slice.
    msg_f32 = rel_r * x_h                         # (HC, D) f32
    msg_bf = msg_f32.astype(jnp.bfloat16)
    msg2_bf = (msg_f32 * msg_f32).astype(jnp.bfloat16)   # square in f32

    # sum / sum-of-squares: two MXU dots accumulating into f32 scratch.
    s_acc[...] += jnp.dot(a, msg_bf, preferred_element_type=jnp.float32)
    s2_acc[...] += jnp.dot(a, msg2_bf, preferred_element_type=jnp.float32)

    # Masked running max / min: additive sentinel built from A (no bool mask,
    # no f32 cast of A), processed in `sub`-head slabs so only a (T, sub, D)
    # temporary is ever live; bf16 on v6e/v7x, f32 on v5e.
    mdt = minmax_dtype
    one = jnp.asarray(1.0, mdt)
    big = jnp.asarray(_BIG, mdt)
    a_m = a if mdt == jnp.bfloat16 else a.astype(mdt)
    pen = (jnp.minimum(a_m, one) - one) * big     # (T, HC): 0 on edge, -BIG else
    msg_m = msg_bf if mdt == jnp.bfloat16 else msg_f32

    mx_c = jnp.full((T, D), -_BIG, mdt)
    mn_c = jnp.full((T, D), _BIG, mdt)
    for si in range(HC // sub):                   # static unroll, small body
        lo = si * sub
        p = pen[:, lo:lo + sub][:, :, None]       # (T, sub, 1)
        m = msg_m[lo:lo + sub][None, :, :]        # (1, sub, D)
        mx_c = jnp.maximum(mx_c, jnp.max(m + p, axis=1))
        mn_c = jnp.minimum(mn_c, jnp.min(m - p, axis=1))
    mx_acc[...] = jnp.maximum(mx_acc[...], mx_c.astype(jnp.float32))
    mn_acc[...] = jnp.minimum(mn_acc[...], mn_c.astype(jnp.float32))

    @pl.when(is_last)
    def _():
        bnd = bnd_ref[0]                          # (T, D) boundary self-message
        S = s_acc[...] + bnd
        S2 = s2_acc[...] + bnd * bnd
        mx = jnp.maximum(mx_acc[...], bnd)        # removes the +-BIG sentinels
        mn = jnp.minimum(mn_acc[...], bnd)

        inv_deg = pna_ref[:, 0:1]                 # 1 / (degree_out + 1)
        scale = pna_ref[:, 1:2]                   # PNA degree scaler
        inv_scale = pna_ref[:, 2:3]               # 1 / clamp(scaler, 1e-2)
        mean = S * inv_deg
        sq_mean = S2 * inv_deg
        std = jnp.sqrt(jnp.maximum(sq_mean - mean * mean, 1e-6))
        stats = jnp.concatenate([mean, mx, mn, std], axis=-1)        # (T, 4D)

        # Split combine: out = x@Wx + stats@W1 + s*(stats@Ws) + (1/s)*(stats@Wis)
        Dout = o_ref.shape[2]
        z = jnp.dot(stats.astype(jnp.bfloat16), wp_ref[...],
                    preferred_element_type=jnp.float32)               # (T, 3*Dout)
        out = (jnp.dot(xt_ref[0].astype(jnp.bfloat16), wx_ref[...],
                       preferred_element_type=jnp.float32)
               + z[:, :Dout]
               + scale * z[:, Dout:2 * Dout]
               + inv_scale * z[:, 2 * Dout:]
               + b_ref[...])
        o_ref[0] = jnp.maximum(out, 0.0)          # ReLU activation


def relconv(x, rel4, at3, boundary, pna, w_x, w_pack, b, *,
            tail_tile, head_chunk, minmax_dtype, vmem_limit_bytes):
    B, N, D = x.shape
    R = at3.shape[0]
    Dout = w_x.shape[1]
    T = min(tail_tile, N)
    HC = min(head_chunk, N)
    assert N % T == 0 and N % HC == 0, "num_node must divide the chosen tiles"
    assert T % 8 == 0, "tail tile must be a multiple of 8 (sublane tiling)"
    assert HC % 128 == 0 or HC == N, "head chunk must be lane-aligned or full"
    sub = math.gcd(HC, 32)

    kernel = functools.partial(relconv_kernel, sub=sub, minmax_dtype=minmax_dtype)
    return pl.pallas_call(
        kernel,
        out_shape=jax.ShapeDtypeStruct((B, N, Dout), jnp.float32),
        grid=(B, N // T, N // HC, R),
        in_specs=[
            pl.BlockSpec((1, HC, D), lambda b_, j, h, r: (b_, h, 0)),      # x head chunk
            pl.BlockSpec((1, T, D), lambda b_, j, h, r: (b_, j, 0)),       # x tail tile
            pl.BlockSpec((1, 1, 1, D), lambda b_, j, h, r: (b_, r, 0, 0)), # relation embed
            pl.BlockSpec((1, T, HC), lambda b_, j, h, r: (r, j, h)),       # A chunk (bf16)
            pl.BlockSpec((1, T, D), lambda b_, j, h, r: (b_, j, 0)),       # boundary
            pl.BlockSpec((T, 3), lambda b_, j, h, r: (j, 0)),              # [1/deg, s, 1/s]
            pl.BlockSpec((D, Dout), lambda b_, j, h, r: (0, 0)),           # W_x (bf16)
            pl.BlockSpec((4 * D, 3 * Dout), lambda b_, j, h, r: (0, 0)),   # [W1|Ws|Wis]
            pl.BlockSpec((1, Dout), lambda b_, j, h, r: (0, 0)),           # bias
        ],
        out_specs=pl.BlockSpec((1, T, Dout), lambda b_, j, h, r: (b_, j, 0)),
        scratch_shapes=[
            pltpu.VMEM((T, D), jnp.float32),      # sum accumulator
            pltpu.VMEM((T, D), jnp.float32),      # sum-of-squares accumulator
            pltpu.VMEM((T, D), jnp.float32),      # running max
            pltpu.VMEM((T, D), jnp.float32),      # running min
        ],
        compiler_params=pltpu.CompilerParams(
            dimension_semantics=("parallel", "parallel", "arbitrary", "arbitrary"),
            vmem_limit_bytes=vmem_limit_bytes),
    )(x, x, rel4, at3, boundary, pna, w_x, w_pack, b)


# ----------------------------------------------------------------------------
# Pallas kernel: 2-layer scoring MLP (Linear -> ReLU -> Linear)
# (Tiny at this size; kept as one full-array-block kernel.)
# ----------------------------------------------------------------------------
def mlp_kernel(x_ref, w1_ref, b1_ref, w2_ref, b2_ref, o_ref):
    h = jnp.dot(x_ref[...], w1_ref[...], preferred_element_type=jnp.float32) + b1_ref[...]
    h = jnp.maximum(h, 0.0)
    o_ref[...] = jnp.dot(h, w2_ref[...], preferred_element_type=jnp.float32) + b2_ref[...]


def mlp(x, w1, b1, w2, b2):
    M, _ = x.shape
    return pl.pallas_call(
        mlp_kernel,
        out_shape=jax.ShapeDtypeStruct((M, 1), jnp.float32),
    )(x, w1, b1, w2, b2)


# ----------------------------------------------------------------------------
# Plain-JAX glue
# ----------------------------------------------------------------------------
def negative_sample_to_tail(h_index, t_index, r_index, num_relation):
    is_t_neg = jnp.all(h_index == h_index[:, :1], axis=-1, keepdims=True)
    new_h = jnp.where(is_t_neg, h_index, t_index)
    new_t = jnp.where(is_t_neg, t_index, h_index)
    new_r = jnp.where(is_t_neg, r_index, r_index + num_relation)
    return new_h, new_t, new_r


def init_params(key, input_dim, hidden_dims, num_relation):
    R = 2 * num_relation
    dims = [input_dim] + list(hidden_dims)
    n_layers = len(dims) - 1
    keys = jax.random.split(key, 4 * n_layers + 6)

    def nrm(k, shape, s=0.1):
        return s * jax.random.normal(k, shape, jnp.float32)

    params = {"query": nrm(keys[0], (R, input_dim))}
    layers = []
    ki = 1
    for i in range(n_layers):
        din, dout = dims[i], dims[i + 1]
        layers.append({
            "w_rel": nrm(keys[ki + 0], (input_dim, R * din)),     # relation_linear
            "b_rel": nrm(keys[ki + 1], (R * din,), 0.01),
            "w_comb": nrm(keys[ki + 2], (13 * din, dout)),        # PNA combine linear
            "b_comb": nrm(keys[ki + 3], (1, dout), 0.01),
        })
        ki += 4
    params["layers"] = layers

    feature_dim = hidden_dims[-1] + input_dim
    params["mlp_w1"] = nrm(keys[ki + 0], (feature_dim, feature_dim))
    params["mlp_b1"] = nrm(keys[ki + 1], (1, feature_dim), 0.01)
    params["mlp_w2"] = nrm(keys[ki + 2], (feature_dim, 1))
    params["mlp_b2"] = nrm(keys[ki + 3], (1, 1), 0.01)
    return params


def nbfnet_forward(params, graph, h_index, t_index, r_index, *, cfg=None):
    cfg = cfg or _tpu_defaults()
    src, dst, erel, num_node, num_relation = graph
    shape = h_index.shape
    B = shape[0]
    N = num_node
    R = 2 * num_relation
    D0 = params["query"].shape[1]

    # graph.undirected(add_inverse=True): add inverse edges with shifted relation
    src2 = jnp.concatenate([src, dst])
    dst2 = jnp.concatenate([dst, src])
    rel2 = jnp.concatenate([erel, erel + num_relation])

    # Relational adjacency in aggregation layout, built directly in bf16:
    #   at3[r, tail, head] = number of edges (head -> tail) with relation r.
    at3 = jnp.zeros((R, N, N), jnp.bfloat16).at[rel2, dst2, src2].add(
        jnp.ones_like(src2, dtype=jnp.bfloat16))

    # degree_out (messages arriving at each tail node) + 1 boundary message.
    deg_p1 = jnp.sum(at3, axis=(0, 2), dtype=jnp.float32) + 1.0
    inv_deg = 1.0 / deg_p1
    logd = jnp.log(deg_p1)
    scale = logd / jnp.maximum(jnp.mean(logd), 1e-6)      # guard all-isolated graph
    inv_scale = 1.0 / jnp.maximum(scale, 1e-2)
    pna = jnp.stack([inv_deg, scale, inv_scale], axis=-1)  # (N, 3)

    h_index, t_index, r_index = negative_sample_to_tail(
        h_index, t_index, r_index, num_relation)
    h0 = h_index[:, 0]
    r0 = r_index[:, 0]

    # bellmanford: query embedding + boundary scatter
    query = params["query"][r0]                                   # (B, D0)
    boundary = jnp.zeros((B, N, D0), jnp.float32)
    boundary = boundary.at[jnp.arange(B), h0].add(query)

    x = boundary
    for lp in params["layers"]:
        din = lp["w_comb"].shape[0] // 13
        # dependent relation embeddings from the query (relation_linear)
        rel = (query @ lp["w_rel"] + lp["b_rel"]).reshape(B, R, din)
        rel4 = rel[:, :, None, :]                                 # (B, R, 1, din)
        # split the 13D combine weight: rows [x | stats | stats*s | stats/s]
        W = lp["w_comb"]
        w_x = W[:din].astype(jnp.bfloat16)
        w_pack = jnp.concatenate(
            [W[din:5 * din], W[5 * din:9 * din], W[9 * din:13 * din]],
            axis=-1).astype(jnp.bfloat16)
        x = relconv(x, rel4, at3, boundary, pna, w_x, w_pack, lp["b_comb"],
                    tail_tile=cfg["tail_tile"], head_chunk=cfg["head_chunk"],
                    minmax_dtype=cfg["minmax_dtype"],
                    vmem_limit_bytes=cfg["vmem_limit_bytes"])

    node_query = jnp.broadcast_to(query[:, None, :], (B, N, D0))
    feat = jnp.concatenate([x, node_query], axis=-1)              # (B, N, F)
    feat_t = jnp.take_along_axis(feat, t_index[..., None], axis=1)  # (B, neg, F)

    M = B * t_index.shape[1]
    score = mlp(feat_t.reshape(M, -1), params["mlp_w1"], params["mlp_b1"],
                params["mlp_w2"], params["mlp_b2"])
    return score.reshape(shape)


# ----------------------------------------------------------------------------
if __name__ == "__main__":
    N = 16           # num_node
    R0 = 3           # num_relation (doubled internally to 6)
    D = 128          # input_dim / hidden dims (multiple of 128 -> lane dense)
    B = 2            # batch (even -> both v7x TensorCores used)
    NEG = 4          # negatives per positive (tail candidates)
    E = 24           # directed edges before adding inverses
    hidden_dims = [128, 128]

    key = jax.random.PRNGKey(0)
    keys = jax.random.split(key, 8)

    src = jax.random.randint(keys[0], (E,), 0, N)
    dst = jax.random.randint(keys[1], (E,), 0, N)
    erel = jax.random.randint(keys[2], (E,), 0, R0)

    heads = jax.random.randint(keys[3], (B,), 0, N)
    h_index = jnp.broadcast_to(heads[:, None], (B, NEG))
    t_index = jax.random.randint(keys[4], (B, NEG), 0, N)
    rels = jax.random.randint(keys[5], (B,), 0, R0)
    r_index = jnp.broadcast_to(rels[:, None], (B, NEG))

    params = init_params(keys[6], D, hidden_dims, R0)

    score = nbfnet_forward(params, (src, dst, erel, N, R0),
                           h_index, t_index, r_index)
    score = jax.block_until_ready(score)
    assert score.shape == (B, NEG)
    assert bool(jnp.all(jnp.isfinite(score)))
    print("KERNEL_OK")
</pallas_src>

<mosaic_0001>
module attributes {stable_mosaic.version = 11 : i64} {
  func.func @relconv_kernel(%arg0: i32, %arg1: i32, %arg2: i32, %arg3: i32, %arg4: memref<1x16x128xf32, #tpu.memory_space<vmem>>, %arg5: memref<1x16x128xf32, #tpu.memory_space<vmem>>, %arg6: memref<1x1x1x128xf32, #tpu.memory_space<vmem>>, %arg7: memref<1x16x16xbf16, #tpu.memory_space<vmem>>, %arg8: memref<1x16x128xf32, #tpu.memory_space<vmem>>, %arg9: memref<16x3xf32, #tpu.memory_space<vmem>>, %arg10: memref<128x128xbf16, #tpu.memory_space<vmem>>, %arg11: memref<512x384xbf16, #tpu.memory_space<vmem>>, %arg12: memref<1x128xf32, #tpu.memory_space<vmem>>, %arg13: memref<1x16x128xf32, #tpu.memory_space<vmem>>, %arg14: memref<16x128xf32, #tpu.memory_space<vmem>>, %arg15: memref<16x128xf32, #tpu.memory_space<vmem>>, %arg16: memref<16x128xf32, #tpu.memory_space<vmem>>, %arg17: memref<16x128xf32, #tpu.memory_space<vmem>>) attributes {dimension_semantics = [#tpu.dimension_semantics<parallel>, #tpu.dimension_semantics<parallel>, #tpu.dimension_semantics<arbitrary>, #tpu.dimension_semantics<arbitrary>], iteration_bounds = array<i64: 2, 1, 1, 6>, scalar_prefetch = 0 : i64, scratch_operands = 4 : i64, tpu.core_type = #tpu.core_type<tc>, window_params = [{transform_indices = @transform_0, window_bounds = array<i64: 1, 16, 128>}, {transform_indices = @transform_1, window_bounds = array<i64: 1, 16, 128>}, {transform_indices = @transform_2, window_bounds = array<i64: 1, 1, 1, 128>}, {transform_indices = @transform_3, window_bounds = array<i64: 1, 16, 16>}, {transform_indices = @transform_4, window_bounds = array<i64: 1, 16, 128>}, {transform_indices = @transform_5, window_bounds = array<i64: 16, 3>}, {pipeline_mode = #tpu.pipeline_mode<synchronous>, transform_indices = @transform_6, window_bounds = array<i64: 128, 128>}, {pipeline_mode = #tpu.pipeline_mode<synchronous>, transform_indices = @transform_7, window_bounds = array<i64: 512, 384>}, {pipeline_mode = #tpu.pipeline_mode<synchronous>, transform_indices = @transform_8, window_bounds = array<i64: 1, 128>}, {transform_indices = @transform_9, window_bounds = array<i64: 1, 16, 128>}]} {
    %c0_i32 = arith.constant 0 : i32
    %0 = arith.cmpi eq, %arg2, %c0_i32 : i32
    %c0_i32_0 = arith.constant 0 : i32
    %1 = arith.cmpi eq, %arg3, %c0_i32_0 : i32
    %2 = arith.andi %0, %1 : i1
    %c0_i32_1 = arith.constant 0 : i32
    %3 = arith.cmpi eq, %arg2, %c0_i32_1 : i32
    %c5_i32 = arith.constant 5 : i32
    %4 = arith.cmpi eq, %arg3, %c5_i32 : i32
    %5 = arith.andi %3, %4 : i1
    %6 = arith.extui %2 : i1 to i32
    %c0_i32_2 = arith.constant 0 : i32
    %7 = arith.cmpi ne, %6, %c0_i32_2 : i32
    scf.if %7 {
      %cst_37 = arith.constant 0.000000e+00 : f32
      %57 = vector.broadcast %cst_37 : f32 to vector<16x128xf32>
      %c0_38 = arith.constant 0 : index
      %c0_39 = arith.constant 0 : index
      %58 = vector.load %arg14[%c0_38, %c0_39] : memref<16x128xf32, #tpu.memory_space<vmem>>, vector<16x128xf32>
      tpu.vector_store %arg14[%c0_38, %c0_39], %57 {strides = array<i32>} : memref<16x128xf32, #tpu.memory_space<vmem>>, vector<16x128xf32>,
      %cst_40 = arith.constant 0.000000e+00 : f32
      %59 = vector.broadcast %cst_40 : f32 to vector<16x128xf32>
      %c0_41 = arith.constant 0 : index
      %c0_42 = arith.constant 0 : index
      %60 = vector.load %arg15[%c0_41, %c0_42] : memref<16x128xf32, #tpu.memory_space<vmem>>, vector<16x128xf32>
      tpu.vector_store %arg15[%c0_41, %c0_42], %59 {strides = array<i32>} : memref<16x128xf32, #tpu.memory_space<vmem>>, vector<16x128xf32>,
      %cst_43 = arith.constant -1.000000e+30 : f32
      %61 = vector.broadcast %cst_43 : f32 to vector<16x128xf32>
      %c0_44 = arith.constant 0 : index
      %c0_45 = arith.constant 0 : index
      %62 = vector.load %arg16[%c0_44, %c0_45] : memref<16x128xf32, #tpu.memory_space<vmem>>, vector<16x128xf32>
      tpu.vector_store %arg16[%c0_44, %c0_45], %61 {strides = array<i32>} : memref<16x128xf32, #tpu.memory_space<vmem>>, vector<16x128xf32>,
      %cst_46 = arith.constant 1.000000e+30 : f32
      %63 = vector.broadcast %cst_46 : f32 to vector<16x128xf32>
      %c0_47 = arith.constant 0 : index
      %c0_48 = arith.constant 0 : index
      %64 = vector.load %arg17[%c0_47, %c0_48] : memref<16x128xf32, #tpu.memory_space<vmem>>, vector<16x128xf32>
      tpu.vector_store %arg17[%c0_47, %c0_48], %63 {strides = array<i32>} : memref<16x128xf32, #tpu.memory_space<vmem>>, vector<16x128xf32>,
    } else {
    }
    %c0 = arith.constant 0 : index
    %c0_3 = arith.constant 0 : index
    %c0_4 = arith.constant 0 : index
    %8 = vector.load %arg7[%c0, %c0_3, %c0_4] : memref<1x16x16xbf16, #tpu.memory_space<vmem>>, vector<1x16x16xbf16>
    %9 = vector.shape_cast %8 : vector<1x16x16xbf16> to vector<16x16xbf16>
    %c0_5 = arith.constant 0 : index
    %c0_6 = arith.constant 0 : index
    %c0_7 = arith.constant 0 : index
    %10 = vector.load %arg4[%c0_5, %c0_6, %c0_7] : memref<1x16x128xf32, #tpu.memory_space<vmem>>, vector<1x16x128xf32>
    %11 = vector.shape_cast %10 : vector<1x16x128xf32> to vector<16x128xf32>
    %c0_8 = arith.constant 0 : index
    %c0_9 = arith.constant 0 : index
    %c0_10 = arith.constant 0 : index
    %c0_11 = arith.constant 0 : index
    %12 = vector.load %arg6[%c0_8, %c0_9, %c0_10, %c0_11] : memref<1x1x1x128xf32, #tpu.memory_space<vmem>>, vector<1x1x1x128xf32>
    %13 = vector.shape_cast %12 : vector<1x1x1x128xf32> to vector<1x128xf32>
    %14 = vector.broadcast %13 : vector<1x128xf32> to vector<16x128xf32>
    %15 = arith.mulf %14, %11 : vector<16x128xf32>
    %16 = arith.truncf %15 : vector<16x128xf32> to vector<16x128xbf16>
    %17 = arith.mulf %15, %15 : vector<16x128xf32>
    %18 = arith.truncf %17 : vector<16x128xf32> to vector<16x128xbf16>
    %c0_12 = arith.constant 0 : index
    %c0_13 = arith.constant 0 : index
    %19 = vector.load %arg14[%c0_12, %c0_13] : memref<16x128xf32, #tpu.memory_space<vmem>>, vector<16x128xf32>
    %cst = arith.constant dense<0.000000e+00> : vector<16x128xf32>
    %20 = tpu.matmul %9, %16, %cst {dimension_numbers = #tpu.dot_dimension_numbers<[1], [0], [0], [1], [0, 0, 1, 1], [], []>} : vector<16x16xbf16>, vector<16x128xbf16>, vector<16x128xf32> -> vector<16x128xf32>
    %21 = arith.addf %19, %20 : vector<16x128xf32>
    %c0_14 = arith.constant 0 : index
    %c0_15 = arith.constant 0 : index
    %22 = vector.load %arg14[%c0_14, %c0_15] : memref<16x128xf32, #tpu.memory_space<vmem>>, vector<16x128xf32>
    tpu.vector_store %arg14[%c0_14, %c0_15], %21 {strides = array<i32>} : memref<16x128xf32, #tpu.memory_space<vmem>>, vector<16x128xf32>,
    %c0_16 = arith.constant 0 : index
    %c0_17 = arith.constant 0 : index
    %23 = vector.load %arg15[%c0_16, %c0_17] : memref<16x128xf32, #tpu.memory_space<vmem>>, vector<16x128xf32>
    %cst_18 = arith.constant dense<0.000000e+00> : vector<16x128xf32>
    %24 = tpu.matmul %9, %18, %cst_18 {dimension_numbers = #tpu.dot_dimension_numbers<[1], [0], [0], [1], [0, 0, 1, 1], [], []>} : vector<16x16xbf16>, vector<16x128xbf16>, vector<16x128xf32> -> vector<16x128xf32>
    %25 = arith.addf %23, %24 : vector<16x128xf32>
    %c0_19 = arith.constant 0 : index
    %c0_20 = arith.constant 0 : index
    %26 = vector.load %arg15[%c0_19, %c0_20] : memref<16x128xf32, #tpu.memory_space<vmem>>, vector<16x128xf32>
    tpu.vector_store %arg15[%c0_19, %c0_20], %25 {strides = array<i32>} : memref<16x128xf32, #tpu.memory_space<vmem>>, vector<16x128xf32>,
    %cst_21 = arith.constant 1.000000e+00 : bf16
    %27 = vector.broadcast %cst_21 : bf16 to vector<16x16xbf16>
    %28 = arith.minimumf %9, %27 : vector<16x16xbf16>
    %cst_22 = arith.constant 1.000000e+00 : bf16
    %29 = vector.broadcast %cst_22 : bf16 to vector<16x16xbf16>
    %30 = arith.subf %28, %29 : vector<16x16xbf16>
    %cst_23 = arith.constant 1.000260e+30 : bf16
    %31 = vector.broadcast %cst_23 : bf16 to vector<16x16xbf16>
    %32 = arith.mulf %30, %31 : vector<16x16xbf16>
    %cst_24 = arith.constant -1.000260e+30 : bf16
    %33 = vector.broadcast %cst_24 : bf16 to vector<16x128xbf16>
    %cst_25 = arith.constant 1.000260e+30 : bf16
    %34 = vector.broadcast %cst_25 : bf16 to vector<16x128xbf16>
    %35 = vector.shape_cast %32 : vector<16x16xbf16> to vector<16x16x1xbf16>
    %36 = vector.shape_cast %16 : vector<16x128xbf16> to vector<1x16x128xbf16>
    %37 = vector.broadcast %36 : vector<1x16x128xbf16> to vector<16x16x128xbf16>
    %38 = vector.broadcast %35 : vector<16x16x1xbf16> to vector<16x16x128xbf16>
    %39 = arith.addf %37, %38 : vector<16x16x128xbf16>
    %cst_26 = arith.constant dense<0xFF80> : vector<16x128xbf16>
    %40 = vector.multi_reduction <maximumf>, %39, %cst_26 [1] : vector<16x16x128xbf16> to vector<16x128xbf16>
    %41 = arith.maximumf %33, %40 : vector<16x128xbf16>
    %42 = vector.broadcast %36 : vector<1x16x128xbf16> to vector<16x16x128xbf16>
    %43 = vector.broadcast %35 : vector<16x16x1xbf16> to vector<16x16x128xbf16>
    %44 = arith.subf %42, %43 : vector<16x16x128xbf16>
    %cst_27 = arith.constant dense<0x7F80> : vector<16x128xbf16>
    %45 = vector.multi_reduction <minimumf>, %44, %cst_27 [1] : vector<16x16x128xbf16> to vector<16x128xbf16>
    %46 = arith.minimumf %34, %45 : vector<16x128xbf16>
    %c0_28 = arith.constant 0 : index
    %c0_29 = arith.constant 0 : index
    %47 = vector.load %arg16[%c0_28, %c0_29] : memref<16x128xf32, #tpu.memory_space<vmem>>, vector<16x128xf32>
    %48 = arith.extf %41 : vector<16x128xbf16> to vector<16x128xf32>
    %49 = arith.maximumf %47, %48 : vector<16x128xf32>
    %c0_30 = arith.constant 0 : index
    %c0_31 = arith.constant 0 : index
    %50 = vector.load %arg16[%c0_30, %c0_31] : memref<16x128xf32, #tpu.memory_space<vmem>>, vector<16x128xf32>
    tpu.vector_store %arg16[%c0_30, %c0_31], %49 {strides = array<i32>} : memref<16x128xf32, #tpu.memory_space<vmem>>, vector<16x128xf32>,
    %c0_32 = arith.constant 0 : index
    %c0_33 = arith.constant 0 : index
    %51 = vector.load %arg17[%c0_32, %c0_33] : memref<16x128xf32, #tpu.memory_space<vmem>>, vector<16x128xf32>
    %52 = arith.extf %46 : vector<16x128xbf16> to vector<16x128xf32>
    %53 = arith.minimumf %51, %52 : vector<16x128xf32>
    %c0_34 = arith.constant 0 : index
    %c0_35 = arith.constant 0 : index
    %54 = vector.load %arg17[%c0_34, %c0_35] : memref<16x128xf32, #tpu.memory_space<vmem>>, vector<16x128xf32>
    tpu.vector_store %arg17[%c0_34, %c0_35], %53 {strides = array<i32>} : memref<16x128xf32, #tpu.memory_space<vmem>>, vector<16x128xf32>,
    %55 = arith.extui %5 : i1 to i32
    %c0_i32_36 = arith.constant 0 : i32
    %56 = arith.cmpi ne, %55, %c0_i32_36 : i32
    scf.if %56 {
      %c0_37 = arith.constant 0 : index
      %c0_38 = arith.constant 0 : index
      %c0_39 = arith.constant 0 : index
      %57 = vector.load %arg8[%c0_37, %c0_38, %c0_39] : memref<1x16x128xf32, #tpu.memory_space<vmem>>, vector<1x16x128xf32>
      %58 = vector.shape_cast %57 : vector<1x16x128xf32> to vector<16x128xf32>
      %c0_40 = arith.constant 0 : index
      %c0_41 = arith.constant 0 : index
      %59 = vector.load %arg14[%c0_40, %c0_41] : memref<16x128xf32, #tpu.memory_space<vmem>>, vector<16x128xf32>
      %60 = arith.addf %59, %58 : vector<16x128xf32>
      %c0_42 = arith.constant 0 : index
      %c0_43 = arith.constant 0 : index
      %61 = vector.load %arg15[%c0_42, %c0_43] : memref<16x128xf32, #tpu.memory_space<vmem>>, vector<16x128xf32>
      %62 = arith.mulf %58, %58 : vector<16x128xf32>
      %63 = arith.addf %61, %62 : vector<16x128xf32>
      %c0_44 = arith.constant 0 : index
      %c0_45 = arith.constant 0 : index
      %64 = vector.load %arg16[%c0_44, %c0_45] : memref<16x128xf32, #tpu.memory_space<vmem>>, vector<16x128xf32>
      %65 = arith.maximumf %64, %58 : vector<16x128xf32>
      %c0_46 = arith.constant 0 : index
      %c0_47 = arith.constant 0 : index
      %66 = vector.load %arg17[%c0_46, %c0_47] : memref<16x128xf32, #tpu.memory_space<vmem>>, vector<16x128xf32>
      %67 = arith.minimumf %66, %58 : vector<16x128xf32>
      %c0_48 = arith.constant 0 : index
      %c0_49 = arith.constant 0 : index
      %68 = vector.load %arg9[%c0_48, %c0_49] : memref<16x3xf32, #tpu.memory_space<vmem>>, vector<16x1xf32>
      %c0_50 = arith.constant 0 : index
      %c1 = arith.constant 1 : index
      %69 = vector.load %arg9[%c0_50, %c1] : memref<16x3xf32, #tpu.memory_space<vmem>>, vector<16x1xf32>
      %c0_51 = arith.constant 0 : index
      %c2 = arith.constant 2 : index
      %70 = vector.load %arg9[%c0_51, %c2] : memref<16x3xf32, #tpu.memory_space<vmem>>, vector<16x1xf32>
      %71 = vector.broadcast %68 : vector<16x1xf32> to vector<16x128xf32>
      %72 = arith.mulf %60, %71 : vector<16x128xf32>
      %73 = vector.broadcast %68 : vector<16x1xf32> to vector<16x128xf32>
      %74 = arith.mulf %63, %73 : vector<16x128xf32>
      %75 = arith.mulf %72, %72 : vector<16x128xf32>
      %76 = arith.subf %74, %75 : vector<16x128xf32>
      %cst_52 = arith.constant 9.99999997E-7 : f32
      %77 = vector.broadcast %cst_52 : f32 to vector<16x128xf32>
      %78 = arith.maximumf %76, %77 : vector<16x128xf32>
      %79 = math.sqrt %78 : vector<16x128xf32>
      %80 = tpu.concatenate %72, %65, %67, %79 in 1 : vector<16x128xf32>, vector<16x128xf32>, vector<16x128xf32>, vector<16x128xf32> -> vector<16x512xf32>
      %81 = arith.truncf %80 : vector<16x512xf32> to vector<16x512xbf16>
      %c0_53 = arith.constant 0 : index
      %c0_54 = arith.constant 0 : index
      %82 = vector.load %arg11[%c0_53, %c0_54] : memref<512x384xbf16, #tpu.memory_space<vmem>>, vector<512x384xbf16>
      %cst_55 = arith.constant dense<0.000000e+00> : vector<16x384xf32>
      %83 = tpu.matmul %81, %82, %cst_55 {dimension_numbers = #tpu.dot_dimension_numbers<[1], [0], [0], [1], [0, 0, 1, 1], [], []>} : vector<16x512xbf16>, vector<512x384xbf16>, vector<16x384xf32> -> vector<16x384xf32>
      %c0_56 = arith.constant 0 : index
      %c0_57 = arith.constant 0 : index
      %c0_58 = arith.constant 0 : index
      %84 = vector.load %arg5[%c0_56, %c0_57, %c0_58] : memref<1x16x128xf32, #tpu.memory_space<vmem>>, vector<1x16x128xf32>
      %85 = vector.shape_cast %84 : vector<1x16x128xf32> to vector<16x128xf32>
      %86 = arith.truncf %85 : vector<16x128xf32> to vector<16x128xbf16>
      %c0_59 = arith.constant 0 : index
      %c0_60 = arith.constant 0 : index
      %87 = vector.load %arg10[%c0_59, %c0_60] : memref<128x128xbf16, #tpu.memory_space<vmem>>, vector<128x128xbf16>
      %cst_61 = arith.constant dense<0.000000e+00> : vector<16x128xf32>
      %88 = tpu.matmul %86, %87, %cst_61 {dimension_numbers = #tpu.dot_dimension_numbers<[1], [0], [0], [1], [0, 0, 1, 1], [], []>} : vector<16x128xbf16>, vector<128x128xbf16>, vector<16x128xf32> -> vector<16x128xf32>
      %89 = vector.extract_strided_slice %83 {offsets = [0, 0], sizes = [16, 128], strides = [1, 1]} : vector<16x384xf32> to vector<16x128xf32>
      %90 = arith.addf %88, %89 : vector<16x128xf32>
      %91 = vector.extract_strided_slice %83 {offsets = [0, 128], sizes = [16, 128], strides = [1, 1]} : vector<16x384xf32> to vector<16x128xf32>
      %92 = vector.broadcast %69 : vector<16x1xf32> to vector<16x128xf32>
      %93 = arith.mulf %92, %91 : vector<16x128xf32>
      %94 = arith.addf %90, %93 : vector<16x128xf32>
      %95 = vector.extract_strided_slice %83 {offsets = [0, 256], sizes = [16, 128], strides = [1, 1]} : vector<16x384xf32> to vector<16x128xf32>
      %96 = vector.broadcast %70 : vector<16x1xf32> to vector<16x128xf32>
      %97 = arith.mulf %96, %95 : vector<16x128xf32>
      %98 = arith.addf %94, %97 : vector<16x128xf32>
      %c0_62 = arith.constant 0 : index
      %c0_63 = arith.constant 0 : index
      %99 = vector.load %arg12[%c0_62, %c0_63] : memref<1x128xf32, #tpu.memory_space<vmem>>, vector<1x128xf32>
      %100 = vector.broadcast %99 : vector<1x128xf32> to vector<16x128xf32>
      %101 = arith.addf %98, %100 : vector<16x128xf32>
      %cst_64 = arith.constant 0.000000e+00 : f32
      %102 = vector.broadcast %cst_64 : f32 to vector<16x128xf32>
      %103 = arith.maximumf %101, %102 : vector<16x128xf32>
      %c0_65 = arith.constant 0 : index
      %c0_66 = arith.constant 0 : index
      %c0_67 = arith.constant 0 : index
      %104 = vector.load %arg13[%c0_65, %c0_66, %c0_67] : memref<1x16x128xf32, #tpu.memory_space<vmem>>, vector<1x16x128xf32>
      %105 = vector.shape_cast %104 : vector<1x16x128xf32> to vector<16x128xf32>
      %106 = vector.shape_cast %103 : vector<16x128xf32> to vector<1x16x128xf32>
      tpu.vector_store %arg13[%c0_65, %c0_66, %c0_67], %106 {strides = array<i32>} : memref<1x16x128xf32, #tpu.memory_space<vmem>>, vector<1x16x128xf32>,
    } else {
    }
    return
  }
  func.func @transform_0(%arg0: i32, %arg1: i32, %arg2: i32, %arg3: i32) -> (i32, i32, i32) {
    %c0_i32 = arith.constant 0 : i32
    %c0_i32_0 = arith.constant 0 : i32
    return %arg0, %arg2, %c0_i32 : i32, i32, i32
  }
  func.func @transform_1(%arg0: i32, %arg1: i32, %arg2: i32, %arg3: i32) -> (i32, i32, i32) {
    %c0_i32 = arith.constant 0 : i32
    %c0_i32_0 = arith.constant 0 : i32
    return %arg0, %arg1, %c0_i32 : i32, i32, i32
  }
  func.func @transform_2(%arg0: i32, %arg1: i32, %arg2: i32, %arg3: i32) -> (i32, i32, i32, i32) {
    %c0_i32 = arith.constant 0 : i32
    %c0_i32_0 = arith.constant 0 : i32
    %c0_i32_1 = arith.constant 0 : i32
    return %arg0, %arg3, %c0_i32, %c0_i32_0 : i32, i32, i32, i32
  }
  func.func @transform_3(%arg0: i32, %arg1: i32, %arg2: i32, %arg3: i32) -> (i32, i32, i32) {
    %c0_i32 = arith.constant 0 : i32
    return %arg3, %arg1, %arg2 : i32, i32, i32
  }
  func.func @transform_4(%arg0: i32, %arg1: i32, %arg2: i32, %arg3: i32) -> (i32, i32, i32) {
    %c0_i32 = arith.constant 0 : i32
    %c0_i32_0 = arith.constant 0 : i32
    return %arg0, %arg1, %c0_i32 : i32, i32, i32
  }
  func.func @transform_5(%arg0: i32, %arg1: i32, %arg2: i32, %arg3: i32) -> (i32, i32) {
    %c0_i32 = arith.constant 0 : i32
    %c0_i32_0 = arith.constant 0 : i32
    return %arg1, %c0_i32 : i32, i32
  }
  func.func @transform_6(%arg0: i32, %arg1: i32, %arg2: i32, %arg3: i32) -> (i32, i32) {
    %c0_i32 = arith.constant 0 : i32
    %c0_i32_0 = arith.constant 0 : i32
    %c0_i32_1 = arith.constant 0 : i32
    return %c0_i32, %c0_i32_0 : i32, i32
  }
  func.func @transform_7(%arg0: i32, %arg1: i32, %arg2: i32, %arg3: i32) -> (i32, i32) {
    %c0_i32 = arith.constant 0 : i32
    %c0_i32_0 = arith.constant 0 : i32
    %c0_i32_1 = arith.constant 0 : i32
    return %c0_i32, %c0_i32_0 : i32, i32
  }
  func.func @transform_8(%arg0: i32, %arg1: i32, %arg2: i32, %arg3: i32) -> (i32, i32) {
    %c0_i32 = arith.constant 0 : i32
    %c0_i32_0 = arith.constant 0 : i32
    %c0_i32_1 = arith.constant 0 : i32
    return %c0_i32, %c0_i32_0 : i32, i32
  }
  func.func @transform_9(%arg0: i32, %arg1: i32, %arg2: i32, %arg3: i32) -> (i32, i32, i32) {
    %c0_i32 = arith.constant 0 : i32
    %c0_i32_0 = arith.constant 0 : i32
    return %arg0, %arg1, %c0_i32 : i32, i32, i32
  }
}

</mosaic_0001>

<bundles_post_ra>
// kernel: tpu_custom_call.1
= control target key start
LH: loop header
LB: loop body
LE: loop exit
PB: predicated region body
PF: predicated region fallthrough
CT: control target
= control target key end

     0   :  { %s4425_s0 = inlined_call_operand.hbm [shape: f32[2,16,128], index: 0, kind: input, shape index: {}]   ;;  %s4426_s1 = inlined_call_operand.hbm [shape: f32[2,16,128], index: 1, kind: input, shape index: {}]   ;;  %s4427_s2 = inlined_call_operand.hbm [shape: f32[2,6,1,128], index: 2, kind: input, shape index: {}]   ;;  %s4428_s3 = inlined_call_operand.hbm [shape: bf16[6,16,16], index: 3, kind: input, shape index: {}]   ;;  %s4429_s4 = inlined_call_operand.vmem [shape: f32[2,16,128], index: 4, kind: input, shape index: {}]   ;;  %s4430_s5 = inlined_call_operand.vmem [shape: f32[16,3], index: 5, kind: input, shape index: {}]   ;;  %s4431_s6 = inlined_call_operand.hbm [shape: bf16[128,128], index: 6, kind: input, shape index: {}]   ;;  %s4432_s7 = inlined_call_operand.hbm [shape: bf16[512,384], index: 7, kind: input, shape index: {}]   ;;  %s4433_s8 = inlined_call_operand.vmem [shape: f32[1,128], index: 8, kind: input, shape index: {}]   ;;  %s4434_s9 = inlined_call_operand.hbm [shape: f32[2,16,128], index: 9, kind: output, shape index: {}]  }
   0x1   :  { %4467 = sst [smem:[#allocation34_spill]] %s4425_s0 }
   0x2   :  { %4468 = sst [smem:[#allocation35_spill]] %s4426_s1 }
   0x3   :  { %4469 = sst [smem:[#allocation36_spill]] %s4428_s3 }
   0x4   :  { %4470 = sst [smem:[#allocation37_spill]] %s4429_s4 }
   0x5   :  { %4471 = sst [smem:[#allocation38_spill]] %s4430_s5 }
   0x6   :  { %4472 = sst [smem:[#allocation39_spill]] %s4431_s6 }
   0x7   :  { %4473 = sst [smem:[#allocation40_spill]] %s4432_s7 }
   0x8   :  { %4474 = sst [smem:[#allocation41_spill]] %s4433_s8 }
   0x9   :  { %4475 = sst [smem:[#allocation42_spill]] %s4434_s9 }
   0xa   :  { %14 = vsyncpa [#allocation7], 0 }
   0xb   :  { %16 = vsyncpa [#allocation7 + $0x1], 0 }
   0xc   :  { %17 = vsyncpa [#allocation10], 0 }
   0xd   :  { %19 = vsyncpa [#allocation10 + $0x1], 0 }
   0xe   :  { %20 = vsyncpa [#allocation13], 0 }
   0xf   :  { %22 = vsyncpa [#allocation13 + $0x1], 0 }
  0x10   :  { %23 = vsyncpa [#allocation16], 0 }
  0x11   :  { %24 = vsyncpa [#allocation8], 0 }
  0x12   :  { %26 = vsyncpa [#allocation8 + $0x1], 0  ;;  %s3614_s30 = smov 0   ;;  %s3616_s10 = smov 0  }
  0x13   :  { %s3618_s11 = smov 0   ;;  %s3620_s12 = smov 0  }
  0x14   :  { %s3622_s13 = smov 0   ;;  %s3624_s14 = smov 0  }
  0x15   :  { %s3626_s15 = smov 0   ;;  %s3628_s16 = smov 0  }
  0x16   :  { %s3630_s17 = smov 0   ;;  %s3632_s18 = smov 0  }
  0x17   :  { %s3634_s19 = smov 0   ;;  %s3636_s20 = smov 0  }
  0x18   :  { %s3638_s21 = smov 0   ;;  %s3640_s22 = smov 0  }
  0x19 LB: > { %4476 = sst [smem:[#allocation25_spill]] %s3506_s15  ;;  %s3685_s23 = sadd.s32 4294967295, %s3534_s22   ;;  %s3534_s22 = sphi %s3640_s22, %s32_s22   ;;  %s3530_s21 = sphi %s3638_s21, %s4562_s21   ;;  %s3526_s20 = sphi %s3636_s20, %s4561_s20   ;;  %s3522_s19 = sphi %s3634_s19, %s4560_s19   ;;  %s3518_s18 = sphi %s3632_s18, %s4559_s18   ;;  %s3514_s17 = sphi %s3630_s17, %s4558_s17   ;;  %s3510_s16 = sphi %s3628_s16, %s4557_s16   ;;  %s3506_s15 = sphi %s3626_s15, %s4547_s15   ;;  %s3502_s14 = sphi %s3624_s14, %s4556_s14   ;;  %s3498_s13 = sphi %s3622_s13, %s4555_s13   ;;  %s3494_s12 = sphi %s3620_s12, %s4554_s12   ;;  %s3490_s11 = sphi %s3618_s11, %s4553_s11   ;;  %s3486_s10 = sphi %s3616_s10, %s4552_s10   ;;  %s3482_s30 = sphi %s3614_s30, %s4551_s30  }
  0x1a   : > { %4477 = sst [smem:[#allocation26_spill]] %s3510_s16  ;;  %p2622_p0 = scmp.ge.s32.totalorder %s3534_s22, 1 }
  0x1b   : > { %4478 = sst [smem:[#allocation27_spill]] %s3518_s18  ;;  %p4437_p1 = scmp.eq.s32.totalorder %s3685_s23, 0 }
  0x1c   : > { %4479 = sst [smem:[#allocation28_spill]] %s3522_s19  ;;  %p322_p3 = scmp.lt.s32.totalorder %s3534_s22, 13 }
  0x1d   : > { %s3536_s25 = smov [#allocation14]   ;;  %s4483_s6 = sld [smem:[#allocation39_spill]] }
  0x1e   : > { %p3691_p4 = pnand %p2622_p0, %p322_p3  ;;  %s343_s26 = sshll.u32 %s3536_s25, 4  ;;  %s344_s26 = int_to_ptr.vmem [resolvable:$true] %s343_s26 }
  0x20   : > { %s4480_s24 = scalar_select %p3691_p4, 1, 0 }
  0x21   : > { %p2882_p5 = pneg %p3691_p4 }
  0x22   : > { %4481 = sst [smem:[#allocation29_spill]] %s4480_s24 }
  0x23   : > { %p3699_p6 = pnand %p2882_p5, %p4437_p1  ;;  %s3192_s9 = scalar_lea.hbm %s4483_s6, 1024 }
  0x24   : > { %p3193_p7 = scmp.ne.s32.totalorder %s4483_s6, %s3192_s9  ;;  %p3199_p11 = scmp.lt.u32.totalorder %s3192_s9, %s4483_s6 }
  0x25   : > { %p4454_p8 = pneg %p3699_p6 }
  0x27   : > { %p3195_p9 = pnand %p4454_p8, %p3193_p7 }
  0x29   : > { %p3196_p10 = pneg %p3195_p9 }
  0x2b   : > { %p3201_p12 = pnand %p3199_p11, %p3196_p10 }
  0x2d   : > { %3204 = shalt.err (!%p3201_p12)
}
  0x2e   : > { %s3205_s28 = scalar_lea.vmem %s344_s26, 1024  ;;  %p3213_p5 = scmp.lt.s32.totalorder %s344_s26, %s344_s26 }
  0x2f   : > { %p3206_p13 = scmp.ne.s32.totalorder %s344_s26, %s3205_s28  ;;  %p3214_p1 = scmp.lt.s32.totalorder %s3205_s28, %s3205_s28 }
  0x31   : > { %p3208_p0 = pnand %p3206_p13, %p4454_p8  ;;  %p3215_p2 = por %p3214_p1, %p3213_p5 }
  0x33   : > { %p3209_p3 = pneg %p3208_p0 }
  0x35   : > { %p3216_p4 = pnand %p3215_p2, %p3209_p3 }
  0x37   : > { %3219 = shalt.err (!%p3216_p4)
}
  0x38   : > { %s4439_s5 = smov 64   ;;  %s4440_s4 = smov 4  }
  0x39   : > { %2885 = dma.hbm_to_vmem [thread:$0]  (!%p3699_p6), %s4483_s6, 1024, %s344_s26, [#allocation13], %s4439_s5, %s4439_s5, %s4440_s4  }
  0x3a   : > { %s2621_s29 = sadd.s32 4294967294, %s3534_s22   ;;  %p74_p1 = scmp.ne.s32.totalorder %s3514_s17, %s3510_s16 }
  0x3b   : > { %p4453_p2 = scmp.eq.s32.totalorder %s3534_s22, 0  ;;  %p80_p4 = scmp.ne.s32.totalorder %s3510_s16, %s3506_s15 }
  0x3c   : > { %p315_p7 = scmp.eq.s32.totalorder %s2621_s29, 11  ;;  %p4484_p10 = scmp.eq.s32.totalorder %s3685_s23, 11 }
  0x3d   : > { %p76_p9 = por %p4453_p2, %p74_p1  ;;  %p4487_p12 = scmp.eq.s32.totalorder %s3685_s23, 0 }
  0x3e   : > { %p3739_p11 = por %p4484_p10, %p74_p1  ;;  %p3749_p0 = por %p315_p7, %p80_p4 }
  0x3f   : > { %p3745_p13 = por %p4487_p12, %p80_p4  ;;  %p4452_p3 = scmp.lt.s32.totalorder %s3534_s22, 12 }
  0x40   : > { %s4485_s28 = scalar_select %p3739_p11, 1, 0 }
  0x41   : > { %s4488_s8 = scalar_select %p3745_p13, 1, 0 }
  0x42   : > { %4486 = sst [smem:[#allocation30_spill]] %s4485_s28  ;;  %s4443_s9 = sand.u32 1, %s3514_s17  }
  0x43   : > { %4489 = sst [smem:[#allocation31_spill]] %s4488_s8  ;;  %s3757_s29 = sshll.u32 %s4443_s9, 4 }
  0x44   : > { %s4490_s26 = scalar_select %p3749_p0, 1, 0 }
  0x45   : > { %s4448_s5 = sshll.u32 %s3530_s21, 8  ;;  %p3762_p5 = pnand %p4452_p3, %p76_p9 }
  0x46   : > { %4491 = sst [smem:[#allocation32_spill]] %s4490_s26  ;;  %s4457_s25 = sand.u32 1, %s3534_s22  }
  0x47   : > { %s4492_s4 = scalar_select %p3762_p5, 1, 0 }
  0x48   : > { %s4493_s1 = sld [smem:[#allocation35_spill]]  ;;  %s400_s9 = scalar_lea.vmem [#allocation9], %s3757_s29 }
  0x49   : > { %s409_s28 = sshll.u32 %s400_s9, 4  ;;  %s3779_s18 = scalar_lea.sflag [#allocation10], %s4457_s25  ;;  %s3775_s28 = int_to_ptr.vmem [resolvable:$true] %s409_s28 }
  0x4a   : > { %p4460_p4 = pneg %p3762_p5 }
  0x4e   : > { %s3772_s26 = scalar_lea.hbm %s4493_s1, %s4448_s5  ;;  %s3225_s5 = scalar_lea.hbm %s4493_s1, 512 }
  0x4f   : > { %s3220_s19 = scalar_lea.hbm %s3772_s26, 256  ;;  %p3226_p10 = scmp.lt.u32.totalorder %s3772_s26, %s4493_s1 }
  0x50   : > { %p3221_p1 = scmp.ne.s32.totalorder %s3772_s26, %s3220_s19  ;;  %p3227_p12 = scmp.lt.u32.totalorder %s3225_s5, %s3220_s19 }
  0x51   : > { %p3229_p2 = scmp.lt.u32.totalorder %s3220_s19, %s3772_s26 }
  0x52   : > { %p3223_p7 = pnand %p4460_p4, %p3221_p1  ;;  %p3228_p3 = por %p3227_p12, %p3226_p10 }
  0x54   : > { %p3224_p9 = pneg %p3223_p7  ;;  %p3230_p8 = por %p3229_p2, %p3228_p3 }
  0x56   : > { %p3231_p0 = pnand %p3230_p8, %p3224_p9 }
  0x58   : > { %3234 = shalt.err (!%p3231_p0)
}
  0x59   : > { %s3235_s9 = scalar_lea.vmem %s3775_s28, 256  ;;  %s3539_s6 = smov [#allocation9]  }
  0x5a   : > { %p3236_p1 = scmp.ne.s32.totalorder %s3775_s28, %s3235_s9  ;;  %s3240_s15 = sshll.u32 %s3539_s6, 4  ;;  %s3241_s15 = int_to_ptr.vmem [resolvable:$false] %s3240_s15 }
  0x5b   : > { %s3242_s16 = scalar_lea.vmem %s3241_s15, 512  ;;  %p3243_p13 = scmp.lt.s32.totalorder %s3775_s28, %s3241_s15 }
  0x5c   : > { %p3238_p7 = pnand %p3236_p1, %p4460_p4  ;;  %p3244_p10 = scmp.lt.s32.totalorder %s3242_s16, %s3235_s9 }
  0x5e   : > { %p3239_p11 = pneg %p3238_p7  ;;  %p3245_p12 = por %p3244_p10, %p3243_p13 }
  0x60   : > { %p3246_p2 = pnand %p3245_p12, %p3239_p11 }
  0x62   : > { %3249 = shalt.err (!%p3246_p2)
}
  0x63   : > { %s4463_s19 = smov 128   ;;  %s4464_s5 = smov 8  }
  0x64   : > { %2895 = dma.hbm_to_vmem [thread:$0]  (!%p3762_p5), %s3772_s26, 256, %s3775_s28, %s3779_s18, %s4463_s19, %s4463_s19, %s4464_s5  }
  0x65   : > { %s3542_s8 = smov [#allocation15]   ;;  %s4494_s7 = sld [smem:[#allocation40_spill]] }
  0x66   : > { %s356_s6 = sshll.u32 %s3542_s8, 4  ;;  %p4495_p11 = pneg %p3699_p6  ;;  %s357_s6 = int_to_ptr.vmem [resolvable:$true] %s356_s6 }
  0x6b   : > { %s3250_s16 = scalar_lea.hbm %s4494_s7, 12288 }
  0x6c   : > { %p3251_p8 = scmp.ne.s32.totalorder %s4494_s7, %s3250_s16  ;;  %p3257_p3 = scmp.lt.u32.totalorder %s3250_s16, %s4494_s7 }
  0x6e   : > { %p3253_p13 = pnand %p3251_p8, %p4495_p11 }
  0x70   : > { %p3254_p0 = pneg %p3253_p13 }
  0x72   : > { %p3259_p9 = pnand %p3257_p3, %p3254_p0 }
  0x74   : > { %3262 = shalt.err (!%p3259_p9)
}
  0x75   : > { %s3263_s28 = scalar_lea.vmem %s357_s6, 12288  ;;  %p4496_p7 = pmov %p4495_p11 }
  0x76   : > { %p3264_p1 = scmp.ne.s32.totalorder %s357_s6, %s3263_s28  ;;  %p3271_p2 = scmp.lt.s32.totalorder %s357_s6, %s357_s6 }
  0x77   : > { %p3272_p4 = scmp.lt.s32.totalorder %s3263_s28, %s3263_s28 }
  0x78   : > { %p3266_p10 = pnand %p3264_p1, %p4496_p7 }
  0x79   : > { %p3273_p5 = por %p3272_p4, %p3271_p2 }
  0x7a   : > { %p3267_p12 = pneg %p3266_p10 }
  0x7c   : > { %p3274_p8 = pnand %p3273_p5, %p3267_p12 }
  0x7e   : > { %3277 = shalt.err (!%p3274_p8)
}
  0x7f   : > { %s3543_s1 = smov 192   ;;  %s3544_s3 = smov 12  }
  0x80   : > { %2888 = dma.hbm_to_vmem [thread:$0]  (!%p3699_p6), %s4494_s7, 12288, %s357_s6, [#allocation16], %s3543_s1, %s3543_s1, %s3544_s3  }
  0x81   : > { %s4497_s26 = sshll.u32 %s3530_s21, 8  ;;  %s4498_s0 = sld [smem:[#allocation34_spill]] }
  0x82   : > { %s377_s16 = scalar_lea.vmem [#allocation6], %s3757_s29  ;;  %s4499_s19 = sand.u32 1, %s3514_s17  }
  0x83   : > { %s386_s28 = sshll.u32 %s377_s16, 4  ;;  %s3842_s27 = scalar_lea.sflag [#allocation7], %s4499_s19  ;;  %s3838_s28 = int_to_ptr.vmem [resolvable:$true] %s386_s28 }
  0x84   : > { %p4500_p6 = scmp.ne.s32.totalorder %s4492_s4, 0 }
  0x86   : > { %p4501_p4 = pneg %p4500_p6 }
  0x87   : > { %s3835_s9 = scalar_lea.hbm %s4498_s0, %s4497_s26  ;;  %s3283_s3 = scalar_lea.hbm %s4498_s0, 512 }
  0x88   : > { %s3278_s5 = scalar_lea.hbm %s3835_s9, 256  ;;  %p3284_p0 = scmp.lt.u32.totalorder %s3835_s9, %s4498_s0 }
  0x89   : > { %p3279_p5 = scmp.ne.s32.totalorder %s3835_s9, %s3278_s5  ;;  %p3285_p3 = scmp.lt.u32.totalorder %s3283_s3, %s3278_s5 }
  0x8a   : > { %p3287_p1 = scmp.lt.u32.totalorder %s3278_s5, %s3835_s9 }
  0x8b   : > { %p3281_p11 = pnand %p3279_p5, %p4501_p4  ;;  %p3286_p9 = por %p3285_p3, %p3284_p0 }
  0x8d   : > { %p3282_p13 = pneg %p3281_p11  ;;  %p3288_p7 = por %p3287_p1, %p3286_p9 }
  0x8f   : > { %p3289_p10 = pnand %p3288_p7, %p3282_p13 }
  0x91   : > { %3292 = shalt.err (!%p3289_p10)
}
  0x92   : > { %s3293_s29 = scalar_lea.vmem %s3838_s28, 256  ;;  %p4502_p2 = pmov %p4501_p4 }
  0x93   : > { %p3294_p12 = scmp.ne.s32.totalorder %s3838_s28, %s3293_s29  ;;  %s3545_s19 = smov [#allocation6]  }
  0x94   : > { %s3298_s26 = sshll.u32 %s3545_s19, 4  ;;  %s3299_s26 = int_to_ptr.vmem [resolvable:$false] %s3298_s26 }
  0x95   : > { %p3296_p8 = pnand %p3294_p12, %p4502_p2  ;;  %s3300_s8 = scalar_lea.vmem %s3299_s26, 512 }
  0x96   : > { %p3301_p4 = scmp.lt.s32.totalorder %s3838_s28, %s3299_s26  ;;  %p3302_p11 = scmp.lt.s32.totalorder %s3300_s8, %s3293_s29 }
  0x97   : > { %p3297_p5 = pneg %p3296_p8 }
  0x98   : > { %p3303_p0 = por %p3302_p11, %p3301_p4 }
  0x9a   : > { %p3304_p3 = pnand %p3303_p0, %p3297_p5 }
  0x9c   : > { %3307 = shalt.err (!%p3304_p3)
}
  0x9d   : > { %s4503_s5 = smov 8   ;;  %s4504_s15 = smov 128  }
  0x9e   : > { %2892 = dma.hbm_to_vmem [thread:$0]  (!%p4500_p6), %s3835_s9, 256, %s3838_s28, %s3842_s27, %s4504_s15, %s4504_s15, %s4503_s5  }
  0x9f   : > { %s47_s4 = sadd.s32 1, %s3526_s20  ;;  %s58_s16 = sadd.s32 1, %s3530_s21 }
  0xa0   : > { %p48_p13 = scmp.ge.s32.totalorder %s47_s4, 6  ;;  %s123_s6 = sadd.s32 1, %s3502_s14 }
  0xa1   : > { %p130_p9 = scmp.ne.s32.totalorder %s3502_s14, %s3498_s13  ;;  %p4506_p1 = scmp.eq.s32.totalorder %s3534_s22, 0 }
  0xa2   : > { %s4564_s4 = smov (%p48_p13, %s47_s4), 0  ;;  %s4566_s16 = smov (!%p48_p13, %s58_s16), %s3530_s21 }
  0xa3   : > { %4505 = sst [smem:[#allocation33_spill]] %s4564_s4  ;;  %s3881_s1 = ssub.s32 %s3526_s20, %s4564_s4 }
  0xa4   : > { %p3885_p6 = por %p130_p9, %p4506_p1  ;;  %p60_p7 = scmp.ge.s32.totalorder %s4566_s16, 2 }
  0xa5   : > { %p136_p10 = scmp.ne.s32.totalorder %s3498_s13, %s3494_s12  ;;  %s421_s28 = sand.u32 1, %s3502_s14  }
  0xa6   : > { %s4568_s16 = smov (%p60_p7, %s4566_s16), 0  ;;  %p4508_p2 = scmp.eq.s32.totalorder %s3685_s23, 0 }
  0xa7   : > { %s62_s3 = ssub.s32 %s3530_s21, %s4568_s16  ;;  %s2863_s24 = smul.u32 6, %s3530_s21 }
  0xa8   : > { %p3897_p8 = por %p136_p10, %p4508_p2  ;;  %p65_p5 = scmp.eq.s32.totalorder %s62_s3, 0 }
  0xa9   : > { %s120_s25 = sor.u32 %s3881_s1, %s62_s3  ;;  %s427_s29 = sadd.s32 %s3526_s20, %s2863_s24 }
  0xaa   : > { %p121_p4 = scmp.eq.s32.totalorder %s120_s25, 0  ;;  %s4510_s19 = sadd.s32 1, %s3514_s17 }
  0xab   : > { %s3909_s12 = scalar_select %p65_p5, %s3514_s17, %s4510_s19  }
  0xac   : > { %s3912_s26 = scalar_select %p121_p4, %s3502_s14, %s123_s6  }
  0xad   : > { %s2633_s8 = sshll.u32 %s427_s29, 4  ;;  %s422_s5 = scalar_lea.vmem [#allocation11], %s421_s28 }
  0xae   : > { %s431_s15 = sshll.u32 %s422_s5, 4  ;;  %s3917_s4 = scalar_lea.hbm %s4427_s2, %s2633_s8  ;;  %s3919_s15 = int_to_ptr.vmem [resolvable:$true] %s431_s15 }
  0xaf   : > { %p4511_p11 = scmp.lt.s32.totalorder %s3534_s22, 12  ;;  %s3308_s6 = scalar_lea.hbm %s3917_s4, 16 }
  0xb0   : > { %p3309_p3 = scmp.ne.s32.totalorder %s3917_s4, %s3308_s6  ;;  %s3313_s28 = scalar_lea.hbm %s4427_s2, 192 }
  0xb1   : > { %p3925_p0 = pnand %p4511_p11, %p3885_p6  ;;  %p3314_p6 = scmp.lt.u32.totalorder %s3917_s4, %s4427_s2 }
  0xb2   : > { %p3315_p7 = scmp.lt.u32.totalorder %s3313_s28, %s3308_s6  ;;  %p3317_p2 = scmp.lt.u32.totalorder %s3308_s6, %s3917_s4 }
  0xb3   : > { %p3310_p13 = pneg %p3925_p0 }
  0xb4   : > { %p3316_p10 = por %p3315_p7, %p3314_p6 }
  0xb5   : > { %p3311_p9 = pnand %p3310_p13, %p3309_p3 }
  0xb6   : > { %p3318_p5 = por %p3317_p2, %p3316_p10 }
  0xb7   : > { %p3312_p1 = pneg %p3311_p9 }
  0xb9   : > { %p3319_p4 = pnand %p3318_p5, %p3312_p1 }
  0xbb   : > { %3322 = shalt.err (!%p3319_p4)
}
  0xbc   : > { %s3323_s25 = scalar_lea.vmem %s3919_s15, 16  ;;  %s3546_s29 = smov [#allocation11]  }
  0xbd   : > { %p3324_p11 = scmp.ne.s32.totalorder %s3919_s15, %s3323_s25  ;;  %s3328_s19 = sshll.u32 %s3546_s29, 4  ;;  %s3329_s19 = int_to_ptr.vmem [resolvable:$false] %s3328_s19 }
  0xbe   : > { %s3330_s8 = scalar_lea.vmem %s3329_s19, 32  ;;  %p3331_p12 = scmp.lt.s32.totalorder %s3919_s15, %s3329_s19 }
  0xbf   : > { %p3326_p3 = pnand %p3324_p11, %p3310_p13  ;;  %p3332_p6 = scmp.lt.s32.totalorder %s3330_s8, %s3323_s25 }
  0xc1   : > { %p3327_p9 = pneg %p3326_p3  ;;  %p3333_p7 = por %p3332_p6, %p3331_p12 }
  0xc3   : > { %p3334_p10 = pnand %p3333_p7, %p3327_p9 }
  0xc5   : > { %3337 = shalt.err (!%p3334_p10)
}
  0xc6   : > { %2898 = dma.hbm_to_vmem [thread:$0]  (!%p3925_p0), %s3917_s4, 16, %s3919_s15, %s3779_s18  }
  0xc7   : > { %s153_s5 = sadd.s32 1, %s3490_s11  ;;  %p160_p12 = scmp.ne.s32.totalorder %s3490_s11, %s3486_s10 }
  0xc8   : > { %p4513_p13 = scmp.eq.s32.totalorder %s3881_s1, 0  ;;  %p4514_p1 = scmp.eq.s32.totalorder %s3534_s22, 0 }
  0xc9   : > { %p166_p5 = scmp.ne.s32.totalorder %s3486_s10, %s3482_s30  ;;  %s440_s6 = sand.u32 1, %s3490_s11  }
  0xca   : > { %s3961_s3 = scalar_select %p4513_p13, %s3490_s11, %s153_s5  }
  0xcb   : > { %p162_p2 = por %p160_p12, %p4514_p1  ;;  %s2765_s0 = sshll.u32 %s3526_s20, 7 }
  0xcc   : > { %p4515_p4 = scmp.eq.s32.totalorder %s3685_s23, 0  ;;  %s2634_s28 = sshll.u32 %s440_s6, 3 }
  0xcd   : > { %s4517_s25 = sld [smem:[#allocation36_spill]]  ;;  %s442_s4 = scalar_lea.vmem [#allocation12], %s2634_s28 }
  0xce   : > { %p3971_p11 = por %p166_p5, %p4515_p4  ;;  %s452_s1 = sshll.u32 %s442_s4, 4  ;;  %s3986_s1 = int_to_ptr.vmem [resolvable:$true] %s452_s1 }
  0xcf   : > { %p4518_p0 = scmp.lt.s32.totalorder %s3534_s22, 12  ;;  %s4520_s15 = sand.u32 1, %s3534_s22  }
  0xd0   : > { %s4516_s7 = scalar_select %p3971_p11, 1, 0 }
  0xd1   : > { %p3982_p3 = pnand %p4518_p0, %p162_p2  ;;  %s3990_s29 = scalar_lea.sflag [#allocation13], %s4520_s15 }
  0xd3   : > { %s3978_s18 = scalar_lea.hbm %s4517_s25, %s2765_s0  ;;  %p3340_p6 = pneg %p3982_p3 }
  0xd4   : > { %s3338_s19 = scalar_lea.hbm %s3978_s18, 128  ;;  %s3343_s6 = scalar_lea.hbm %s4517_s25, 768 }
  0xd5   : > { %p3339_p9 = scmp.ne.s32.totalorder %s3978_s18, %s3338_s19  ;;  %p3344_p12 = scmp.lt.u32.totalorder %s3978_s18, %s4517_s25 }
  0xd6   : > { %p3345_p13 = scmp.lt.u32.totalorder %s3343_s6, %s3338_s19  ;;  %p3347_p2 = scmp.lt.u32.totalorder %s3338_s19, %s3978_s18 }
  0xd7   : > { %p3341_p7 = pnand %p3340_p6, %p3339_p9 }
  0xd8   : > { %p3346_p1 = por %p3345_p13, %p3344_p12 }
  0xd9   : > { %p3342_p10 = pneg %p3341_p7 }
  0xda   : > { %p3348_p5 = por %p3347_p2, %p3346_p1 }
  0xdc   : > { %p3349_p4 = pnand %p3348_p5, %p3342_p10 }
  0xde   : > { %3352 = shalt.err (!%p3349_p4)
}
  0xdf   : > { %s3353_s9 = scalar_lea.vmem %s3986_s1, 128  ;;  %s3547_s24 = smov [#allocation12]  }
  0xe0   : > { %p3354_p0 = scmp.ne.s32.totalorder %s3986_s1, %s3353_s9  ;;  %s3358_s4 = sshll.u32 %s3547_s24, 4  ;;  %s3359_s4 = int_to_ptr.vmem [resolvable:$false] %s3358_s4 }
  0xe1   : > { %s3360_s15 = scalar_lea.vmem %s3359_s4, 256  ;;  %p3361_p11 = scmp.lt.s32.totalorder %s3986_s1, %s3359_s4 }
  0xe2   : > { %p3356_p9 = pnand %p3354_p0, %p3340_p6  ;;  %p3362_p12 = scmp.lt.s32.totalorder %s3360_s15, %s3353_s9 }
  0xe4   : > { %p3357_p7 = pneg %p3356_p9  ;;  %p3363_p13 = por %p3362_p12, %p3361_p11 }
  0xe6   : > { %p3364_p1 = pnand %p3363_p13, %p3357_p7 }
  0xe8   : > { %3367 = shalt.err (!%p3364_p1)
}
  0xe9   : > { %s4521_s19 = smov 4   ;;  %s4522_s8 = smov 64  }
  0xea   : > { %2901 = dma.hbm_to_vmem [thread:$0]  (!%p3982_p3), %s3978_s18, 128, %s3986_s1, %s3990_s29, %s4522_s8, %s4522_s8, %s4521_s19  }
  0xeb   : > { %s4523_s5 = sld [smem:[#allocation29_spill]] }
  0xf1   : > { %p4524_p6 = scmp.ne.s32.totalorder %s4523_s5, 0 }
  0xf2   : > { %s4525_s6 = sld [smem:[#allocation26_spill]] (!%p4524_p6)  ;;  %s4526_s0 = sld [smem:[#allocation31_spill]] (!%p4524_p6) }
  0xf3   : > { %477 = sbr.rel (%p4524_p6) target bundleno = 985 (0x3d9), region = 56 }
  0xf8   : > { %s4024_s28 = sand.u32 (!%p4524_p6), 1, %s4525_s6   ;;  %p4527_p11 = scmp.ne.s32.totalorder (!%p4524_p6), %s4526_s0, 0 }
  0xf9   : > { %s4027_s9 = sshll.u32 (!%p4524_p6), %s4024_s28, 4  ;;  %s480_s30 = scalar_lea.sflag (!%p4524_p6), [#allocation7], %s4024_s28 }
  0xfa   : > { %s483_s24 = scalar_lea.vmem [#allocation6], %s4027_s9 }
  0xfb   : > { %3453 = dma.done.wait (%p4527_p11), %s480_s30, 256  }
  0xfc   : > { %3455 = vsyncadd (%p4527_p11), %s480_s30, 4294967040  ;;  %s488_s18 = sand.u32 1, %s3685_s23   ;;  %s492_s29 = scalar_lea.vmem [#allocation9], %s4027_s9 }
  0xfd   : > { %s489_s1 = scalar_lea.sflag [#allocation10], %s488_s18 }
  0xfe   : > { %3457 = dma.done.wait (%p4527_p11), %s489_s1, 256  }
  0xff   : > { %3459 = vsyncadd (%p4527_p11), %s489_s1, 4294967040  ;;  %s499_s4 = sand.u32 1, %s3498_s13  }
 0x100   : > { %s4042_s15 = scalar_lea.vmem [#allocation11], %s499_s4 }
 0x101   : > { %3461 = dma.done.wait (%p3897_p8), %s489_s1, 16  }
 0x102   : > { %3463 = vsyncadd (%p3897_p8), %s489_s1, 4294967280  ;;  %s507_s19 = sand.u32 1, %s3486_s10   ;;  %s506_s5 = scalar_lea.sflag [#allocation13], %s488_s18 }
 0x103   : > { %s4049_s8 = sshll.u32 %s507_s19, 3  ;;  %p4528_p3 = scmp.ne.s32.totalorder %s4516_s7, 0 }
 0x104   : > { %s509_s6 = scalar_lea.vmem [#allocation12], %s4049_s8 }
 0x105   : > { %3465 = dma.done.wait (%p4528_p3), %s506_s5, 128  }
 0x106   : > { %3467 = vsyncadd (%p4528_p3), %s506_s5, 4294967168  ;;  %p4529_p10 = scmp.eq.s32.totalorder %s3685_s23, 0 }
 0x108   : > { %3469 = dma.done.wait (%p4529_p10), [#allocation13], 1024   ;;  %p4530_p2 = pmov %p4529_p10 }
 0x10a   : > { %3471 = vsyncadd (%p4530_p2), [#allocation13], 4294966272  ;;  %p4531_p8 = pmov %p4530_p2 }
 0x10b   : > { %p4532_p5 = pmov %p4530_p2 }
 0x10c   : > { %3473 = dma.done.wait (%p4531_p8), [#allocation16], 12288  }
 0x10d   : > { %3475 = vsyncadd (%p4532_p5), [#allocation16], 4294955008  ;;  %s4533_s27 = sld [smem:[#allocation28_spill]]  ;;  %s4534_s0 = sld [smem:[#allocation27_spill]] }
 0x10e   : > { %s4535_s1 = sld [smem:[#allocation37_spill]]  ;;  %s4074_s19 = scalar_lea.vmem [#allocation17], %s4027_s9 }
 0x113   : > { %p584_p4 = scmp.lt.s32.totalorder %s4533_s27, 1  ;;  %p605_p0 = scmp.eq.s32.totalorder %s4534_s0, 0 }
 0x114   : > { %p608_p9 = scmp.eq.s32.totalorder %s4534_s0, 5  ;;  %v3548_v0 = vmov (%p605_p0), 0.0   ;;  %v3549_v1 = vmov (%p605_p0), -1e+30   ;;  %v3550_v2 = vmov (%p605_p0), 1e+30  }
 0x115   : > { %s4570_s27 = smov (!%p584_p4, %s4533_s27), 1  ;;  %612 = sbr.rel (!%p605_p0) target bundleno = 284 (0x11c), region = 84 }
 0x116   : > { %s2766_s7 = sshll.u32 %s4570_s27, 4  ;;  %613 = vst [vmem:[#allocation2] sm:$0xff] (%p605_p0), %v3548_v0  ;;  %614 = vst [vmem:[#allocation2 + $0x8] sm:$0xff] (%p605_p0), %v3548_v0 }
 0x117   : > { %s4071_s4 = scalar_lea.vmem %s4535_s1, %s2766_s7  ;;  %615 = vst [vmem:[#allocation3] sm:$0xff] (%p605_p0), %v3548_v0  ;;  %616 = vst [vmem:[#allocation3 + $0x8] sm:$0xff] (%p605_p0), %v3548_v0 }
 0x118   : > { %617 = vst [vmem:[#allocation4] sm:$0xff] (%p605_p0), %v3549_v1  ;;  %618 = vst [vmem:[#allocation4 + $0x8] sm:$0xff] (%p605_p0), %v3549_v1 }
 0x119   : > { %619 = vst [vmem:[#allocation5] sm:$0xff] (%p605_p0), %v3550_v2  ;;  %620 = vst [vmem:[#allocation5 + $0x8] sm:$0xff] (%p605_p0), %v3550_v2 }
 0x11c PF: > { %v623_v3 = vld [vmem:[%s483_s24] sm:$0xff]  ;;  %v624_v4 = vld [vmem:[%s483_s24 + $0x8] sm:$0xff]  ;;  %v3551_v6 = vmov 0.0   ;;  %vm3552_vm0 = vmmov 0   ;;  %v755_v11 = vlaneseq  ;;  %v3553_v15 = vmov 1065369472  }
 0x11d   : > { %v2648_v5 = vld [vmem:[%s4042_s15] ss:$0 sm:$0xff]  ;;  %2827 = vmatprep.subr.bf16.mxu0 %v3551_v6  ;;  %2833 = vmatprep.subr.bf16.mxu1 %v3551_v6  ;;  %v621_v9 = vld [vmem:[%s509_s6] sm:$0xf]  ;;  %v622_v10 = vld [vmem:[%s509_s6 + $0x4] sm:$0xf] }
 0x11e   : > { %v632_v7 = vmul.f32 %v2648_v5, %v623_v3  ;;  %v633_v8 = vmul.f32 %v2648_v5, %v624_v4  ;;  %2829 = vmatprep.mubr.msk.bf16.mxu0 %vm3552_vm0, %v3551_v6  ;;  %2835 = vmatprep.mubr.msk.bf16.mxu1 %vm3552_vm0, %v3551_v6  ;;  %v741_v16 = vmin.bf16 %v3553_v15, %v621_v9  ;;  %vm645_vm1 = vcmask 130048   ;;  %s4537_s8 = sld [smem:[#allocation38_spill]] (%p608_p9)  ;;  %s4538_s27 = sld [smem:[#allocation41_spill]] (%p608_p9) }
 0x11f   : > { %v2649_v17 = vcombine.low %v621_v9, %v622_v10  ;;  %v742_v18 = vmin.bf16 %v3553_v15, %v622_v10  ;;  %v756_v22 = vshrl.u32 %v755_v11, 7  ;;  %vm1288_vm2 = vcmask 1041409  }
 0x120   : > { %v4085_v12 = vpack.c.bf16 %v633_v8, %v632_v7  ;;  %v635_v13 = vmul.f32 %v632_v7, %v632_v7  ;;  %v636_v14 = vmul.f32 %v633_v8, %v633_v8  ;;  %v743_v20 = vsub.bf16 %v741_v16, %v3553_v15 }
 0x121   : > { %v744_v21 = vsub.bf16 %v742_v18, %v3553_v15  ;;  %v816_v26 = vsub.s32 4, %v756_v22  ;;  %v757_v27 = vsub.s32 0, %v756_v22  ;;  %v830_v30 = vsub.s32 5, %v756_v22 }
 0x122   : > { %2828 = vmatpush3.bf16.msra.mxu0 %v4085_v12  ;;  %v637_v19 = vpack.c.bf16 %v636_v14, %v635_v13  ;;  %v745_v23 = vmul.bf16 1900704074, %v743_v20  ;;  %v774_v31 = vsub.s32 1, %v756_v22  ;;  %v844_v41 = vsub.s32 6, %v756_v22 }
 0x123   : > { %v746_v24 = vmul.bf16 1900704074, %v744_v21  ;;  %v788_v42 = vsub.s32 2, %v756_v22  ;;  %v858_v47 = vsub.s32 7, %v756_v22  ;;  %v802_v48 = vsub.s32 3, %v756_v22 }
 0x124   : > { %2834 = vmatpush3.bf16.msra.mxu1 %v637_v19  ;;  %vm1290_vm3 = vcmask 1042434   ;;  %vm1292_vm4 = vcmask 1043459   ;;  %vm1294_vm5 = vcmask 1044484   ;;  %vm1296_vm6 = vcmask 1045509  }
 0x125   : > { %2830 = vmatmul.mubr.msk.bf16.vlgmr.msra.gmra.mrb[0].mxu0 %vm645_vm1, %v2649_v17  ;;  %v2652_v25 = vcombine.low %v745_v23, %v746_v24  ;;  %vm1298_vm7 = vcmask 1046534   ;;  %vm1300_vm8 = vcmask 1047559   ;;  %vm3560_vm13 = vmmov (%p608_p9), 0  }
 0x127   : > { %2836 = vmatmul.mubr.msk.bf16.vlgmr.msra.gmra.mrb[0].mxu1 %vm645_vm1, %v2649_v17  ;;  %v753_v28 = vpack.i.b16 %v2652_v25, %v2652_v25  ;;  %v762_v29 = vshrl.u32 %v2652_v25, 16 }
 0x129   : > { %v817_v32 = vrot.slane %v753_v28, %v816_v26  ;;  %v758_v33 = vrot.slane %v753_v28, %v757_v27  ;;  %v763_v34 = vpack.i.b16 %v762_v29, %v762_v29  ;;  %v831_v35 = vrot.slane %v753_v28, %v830_v30 }
 0x12a   : > { %v775_v36 = vrot.slane %v753_v28, %v774_v31  ;;  %v845_v43 = vrot.slane %v753_v28, %v844_v41  ;;  %v789_v44 = vrot.slane %v753_v28, %v788_v42  ;;  %v859_v49 = vrot.slane %v753_v28, %v858_v47 }
 0x12b   : > { %819 = vbcast.lane.c.b16.xlu1 %v817_v32, 256  ;;  %760 = vbcast.lane.c.b16.xlu0 %v758_v33, 256  ;;  %v824_v37 = vrot.slane %v763_v34, %v816_v26  ;;  %v768_v38 = vrot.slane %v763_v34, %v757_v27  ;;  %v838_v39 = vrot.slane %v763_v34, %v830_v30 }
 0x12c   : > { %v782_v40 = vrot.slane %v763_v34, %v774_v31  ;;  %v852_v45 = vrot.slane %v763_v34, %v844_v41  ;;  %v796_v46 = vrot.slane %v763_v34, %v788_v42  ;;  %v803_v50 = vrot.slane %v753_v28, %v802_v48 }
 0x12d   : > { %v866_v51 = vrot.slane %v763_v34, %v858_v47  ;;  %v810_v52 = vrot.slane %v763_v34, %v802_v48 }
 0x12f   : > { %833 = vbcast.lane.c.b16.xlu1 %v831_v35, 256  ;;  %777 = vbcast.lane.c.b16.xlu0 %v775_v36, 256 }
 0x133   : > { %826 = vbcast.lane.c.b16.xlu1 %v824_v37, 256  ;;  %770 = vbcast.lane.c.b16.xlu0 %v768_v38, 256 }
 0x137   : > { %840 = vbcast.lane.c.b16.xlu1 %v838_v39, 256  ;;  %784 = vbcast.lane.c.b16.xlu0 %v782_v40, 256 }
 0x13b   : > { %847 = vbcast.lane.c.b16.xlu1 %v845_v43, 256  ;;  %791 = vbcast.lane.c.b16.xlu0 %v789_v44, 256 }
 0x13f   : > { %854 = vbcast.lane.c.b16.xlu1 %v852_v45, 256  ;;  %798 = vbcast.lane.c.b16.xlu0 %v796_v46, 256 }
 0x143   : > { %861 = vbcast.lane.c.b16.xlu1 %v859_v49, 256  ;;  %805 = vbcast.lane.c.b16.xlu0 %v803_v50, 256 }
 0x147   : > { %868 = vbcast.lane.c.b16.xlu1 %v866_v51, 256  ;;  %812 = vbcast.lane.c.b16.xlu0 %v810_v52, 256 }
 0x19d   : > { %v820_v53 = vpop.permute.xlu1 %819  ;;  %v761_v54 = vpop.permute.xlu0 %760 }
 0x19e   : > { %v878_v55 = vadd.bf16 %v820_v53, %v4085_v12  ;;  %v1070_v56 = vsub.bf16 %v4085_v12, %v820_v53  ;;  %v870_v57 = vadd.bf16 %v761_v54, %v4085_v12  ;;  %v1062_v58 = vsub.bf16 %v4085_v12, %v761_v54 }
 0x1a0   : > { %v966_v59 = vunpack.i.l.bf16 %v878_v55  ;;  %v967_v60 = vunpack.i.h.bf16 %v878_v55  ;;  %v1158_v61 = vunpack.i.l.bf16 %v1070_v56  ;;  %v1159_v62 = vunpack.i.h.bf16 %v1070_v56 }
 0x1a1   : > { %v886_v63 = vunpack.i.l.bf16 %v870_v57  ;;  %v887_v0 = vunpack.i.h.bf16 %v870_v57  ;;  %v1078_v1 = vunpack.i.l.bf16 %v1062_v58  ;;  %v1079_v2 = vunpack.i.h.bf16 %v1062_v58  ;;  %v834_v3 = vpop.permute.xlu1 %833  ;;  %v778_v8 = vpop.permute.xlu0 %777 }
 0x1a2   : > { %v968_v4 = vmax.f32 %v966_v59, %v967_v60  ;;  %v1160_v5 = vmin.f32 %v1158_v61, %v1159_v62  ;;  %v880_v6 = vadd.bf16 %v834_v3, %v4085_v12  ;;  %v1072_v7 = vsub.bf16 %v4085_v12, %v834_v3 }
 0x1a3   : > { %v888_v9 = vmax.f32 %v886_v63, %v887_v0  ;;  %v1080_v10 = vmin.f32 %v1078_v1, %v1079_v2  ;;  %v872_v11 = vadd.bf16 %v778_v8, %v4085_v12  ;;  %v1064_v13 = vsub.bf16 %v4085_v12, %v778_v8 }
 0x1a4   : > { %v969_v14 = vrot.slane %v968_v4, 4  ;;  %v1161_v15 = vrot.slane %v1160_v5, 4  ;;  %v986_v16 = vunpack.i.l.bf16 %v880_v6  ;;  %v987_v17 = vunpack.i.h.bf16 %v880_v6 }
 0x1a5   : > { %v889_v18 = vrot.slane %v888_v9, 4  ;;  %v1081_v19 = vrot.slane %v1080_v10, 4  ;;  %v1178_v20 = vunpack.i.l.bf16 %v1072_v7  ;;  %v1179_v21 = vunpack.i.h.bf16 %v1072_v7 }
 0x1a6   : > { %v970_v22 = vmax.f32 %v968_v4, %v969_v14  ;;  %v1162_v23 = vmin.f32 %v1160_v5, %v1161_v15  ;;  %v988_v24 = vmax.f32 %v986_v16, %v987_v17  ;;  %v906_v25 = vunpack.i.l.bf16 %v872_v11  ;;  %v827_v17 = vpop.permute.xlu1 %826 }
 0x1a7   : > { %v890_v26 = vmax.f32 %v888_v9, %v889_v18  ;;  %v1082_v27 = vmin.f32 %v1080_v10, %v1081_v19  ;;  %v1180_v28 = vmin.f32 %v1178_v20, %v1179_v21  ;;  %v907_v29 = vunpack.i.h.bf16 %v872_v11 }
 0x1a8   : > { %v971_v30 = vrot.slane %v970_v22, 2  ;;  %v1163_v31 = vrot.slane %v1162_v23, 2  ;;  %v989_v32 = vrot.slane %v988_v24, 4  ;;  %v1098_v33 = vunpack.i.l.bf16 %v1064_v13 }
 0x1a9   : > { %v891_v34 = vrot.slane %v890_v26, 2  ;;  %v1083_v35 = vrot.slane %v1082_v27, 2  ;;  %v1181_v36 = vrot.slane %v1180_v28, 4  ;;  %v908_v37 = vmax.f32 %v906_v25, %v907_v29 }
 0x1aa   : > { %v972_v38 = vmax.f32 %v970_v22, %v971_v30  ;;  %v1164_v39 = vmin.f32 %v1162_v23, %v1163_v31  ;;  %v990_v40 = vmax.f32 %v988_v24, %v989_v32  ;;  %v1099_v41 = vunpack.i.h.bf16 %v1064_v13  ;;  %v771_v22 = vpop.permute.xlu0 %770 }
 0x1ab   : > { %v892_v42 = vmax.f32 %v890_v26, %v891_v34  ;;  %v1084_v43 = vmin.f32 %v1082_v27, %v1083_v35  ;;  %v1182_v44 = vmin.f32 %v1180_v28, %v1181_v36  ;;  %v909_v45 = vrot.slane %v908_v37, 4 }
 0x1ac   : > { %v973_v46 = vrot.slane %v972_v38, 1  ;;  %v1165_v47 = vrot.slane %v1164_v39, 1  ;;  %v991_v48 = vrot.slane %v990_v40, 2  ;;  %v1100_v49 = vmin.f32 %v1098_v33, %v1099_v41 }
 0x1ad   : > { %v893_v50 = vrot.slane %v892_v42, 1  ;;  %v1085_v51 = vrot.slane %v1084_v43, 1  ;;  %v1183_v52 = vrot.slane %v1182_v44, 2  ;;  %v910_v53 = vmax.f32 %v908_v37, %v909_v45 }
 0x1ae   : > { %v974_v54 = vmax.f32 %v972_v38, %v973_v46  ;;  %v1166_v55 = vmin.f32 %v1164_v39, %v1165_v47  ;;  %v992_v56 = vmax.f32 %v990_v40, %v991_v48  ;;  %v1101_v57 = vrot.slane %v1100_v49, 4  ;;  %v785_v48 = vpop.permute.xlu0 %784 }
 0x1af   : > { %v894_v58 = vmax.f32 %v892_v42, %v893_v50  ;;  %v1086_v59 = vmin.f32 %v1084_v43, %v1085_v51  ;;  %v1184_v60 = vmin.f32 %v1182_v44, %v1183_v52  ;;  %v911_v61 = vrot.slane %v910_v53, 2  ;;  %v841_v43 = vpop.permute.xlu1 %840 }
 0x1b0   : > { %v975_v62 = vpack.i.bf16 %v974_v54, %v974_v54  ;;  %v993_v63 = vrot.slane %v992_v56, 1  ;;  %v1102_v0 = vmin.f32 %v1100_v49, %v1101_v57  ;;  %v1167_v1 = vpack.i.bf16 %v1166_v55, %v1166_v55 }
 0x1b1   : > { %v1185_v2 = vrot.slane %v1184_v60, 1  ;;  %v912_v3 = vmax.f32 %v910_v53, %v911_v61  ;;  %v895_v4 = vpack.i.bf16 %v894_v58, %v894_v58  ;;  %v1087_v7 = vpack.i.bf16 %v1086_v59, %v1086_v59 }
 0x1b2   : > { %v994_v5 = vmax.f32 %v992_v56, %v993_v63  ;;  %v1103_v6 = vrot.slane %v1102_v0, 2  ;;  %v3554_v9 = vmov 4048220490   ;;  %v3555_v14 = vmov 1900704074  }
 0x1b3   : > { %v1186_v8 = vmin.f32 %v1184_v60, %v1185_v2  ;;  %v4097_v10 = vmax.bf16 %v3554_v9, %v975_v62  ;;  %v913_v11 = vrot.slane %v912_v3, 1  ;;  %v4100_v15 = vmin.bf16 %v3555_v14, %v1167_v1 }
 0x1b4   : > { %v1104_v13 = vmin.f32 %v1102_v0, %v1103_v6  ;;  %v995_v16 = vpack.i.bf16 %v994_v5, %v994_v5  ;;  %v4103_v18 = vmax.bf16 %v3554_v9, %v895_v4  ;;  %v879_v20 = vadd.bf16 %v827_v17, %v4085_v12 }
 0x1b5   : > { %v1071_v21 = vsub.bf16 %v4085_v12, %v827_v17  ;;  %v4108_v23 = vmin.bf16 %v3555_v14, %v1087_v7  ;;  %v1187_v24 = vpack.i.bf16 %v1186_v8, %v1186_v8  ;;  %v871_v25 = vadd.bf16 %v771_v22, %v4085_v12 }
 0x1b6   : > { %v1105_v19 = vrot.slane %v1104_v13, 1  ;;  %v1063_v26 = vsub.bf16 %v4085_v12, %v771_v22  ;;  %v1264_v27 = vunpack.c.l.bf16 %v4097_v10  ;;  %v4113_v28 = vmax.f32 %v912_v3, %v913_v11 }
 0x1b7   : > { %v976_v29 = vunpack.i.l.bf16 %v879_v20  ;;  %v977_v30 = vunpack.i.h.bf16 %v879_v20  ;;  %v1325_v31 = vunpack.c.l.bf16 %v4100_v15  ;;  %v4117_v32 = vmax.bf16 %v3554_v9, %v995_v16 }
 0x1b8   : > { %v1168_v33 = vunpack.i.l.bf16 %v1071_v21  ;;  %v1169_v34 = vunpack.i.h.bf16 %v1071_v21  ;;  %v4119_v35 = vmin.f32 %v1104_v13, %v1105_v19  ;;  %v896_v37 = vunpack.i.l.bf16 %v871_v25 }
 0x1b9   : > { %v978_v36 = vmax.f32 %v976_v29, %v977_v30  ;;  %v897_v38 = vunpack.i.h.bf16 %v871_v25  ;;  %v4122_v39 = vmin.bf16 %v3555_v14, %v1187_v24  ;;  %v1088_v41 = vunpack.i.l.bf16 %v1063_v26 }
 0x1ba   : > { %v1170_v40 = vmin.f32 %v1168_v33, %v1169_v34  ;;  %v1089_v42 = vunpack.i.h.bf16 %v1063_v26  ;;  %v915_v44 = vpack.i.bf16 %v4113_v28, %v4113_v28  ;;  %v881_v47 = vadd.bf16 %v841_v43, %v4085_v12 }
 0x1bb   : > { %v979_v45 = vrot.slane %v978_v36, 4  ;;  %v898_v46 = vmax.f32 %v896_v37, %v897_v38  ;;  %v1073_v51 = vsub.bf16 %v4085_v12, %v841_v43  ;;  %v873_v52 = vadd.bf16 %v785_v48, %v4085_v12 }
 0x1bc   : > { %v1171_v49 = vrot.slane %v1170_v40, 4  ;;  %v1090_v50 = vmin.f32 %v1088_v41, %v1089_v42  ;;  %v1107_v53 = vpack.i.bf16 %v4119_v35, %v4119_v35  ;;  %v996_v56 = vunpack.i.l.bf16 %v881_v47 }
 0x1bd   : > { %v980_v54 = vmax.f32 %v978_v36, %v979_v45  ;;  %v899_v55 = vrot.slane %v898_v46, 4  ;;  %v997_v59 = vunpack.i.h.bf16 %v881_v47  ;;  %v1188_v60 = vunpack.i.l.bf16 %v1073_v51 }
 0x1be   : > { %v1172_v57 = vmin.f32 %v1170_v40, %v1171_v49  ;;  %v1091_v58 = vrot.slane %v1090_v50, 4  ;;  %v1189_v63 = vunpack.i.h.bf16 %v1073_v51  ;;  %v916_v0 = vunpack.i.l.bf16 %v873_v52 }
 0x1bf   : > { %v981_v61 = vrot.slane %v980_v54, 2  ;;  %v900_v62 = vmax.f32 %v898_v46, %v899_v55  ;;  %v998_v3 = vmax.f32 %v996_v56, %v997_v59  ;;  %v917_v4 = vunpack.i.h.bf16 %v873_v52 }
 0x1c0   : > { %v1173_v1 = vrot.slane %v1172_v57, 2  ;;  %v1092_v2 = vmin.f32 %v1090_v50, %v1091_v58  ;;  %v1190_v7 = vmin.f32 %v1188_v60, %v1189_v63  ;;  %v1065_v8 = vsub.bf16 %v4085_v12, %v785_v48 }
 0x1c1   : > { %v982_v5 = vmax.f32 %v980_v54, %v981_v61  ;;  %v901_v6 = vrot.slane %v900_v62, 2  ;;  %v999_v16 = vrot.slane %v998_v3, 4  ;;  %v918_v17 = vmax.f32 %v916_v0, %v917_v4 }
 0x1c2   : > { %v1174_v11 = vmin.f32 %v1172_v57, %v1173_v1  ;;  %v1093_v13 = vrot.slane %v1092_v2, 2  ;;  %v1191_v21 = vrot.slane %v1190_v7, 4  ;;  %v1108_v22 = vunpack.i.l.bf16 %v1065_v8 }
 0x1c3   : > { %v983_v19 = vrot.slane %v982_v5, 1  ;;  %v902_v20 = vmax.f32 %v900_v62, %v901_v6  ;;  %v1000_v26 = vmax.f32 %v998_v3, %v999_v16  ;;  %v919_v29 = vrot.slane %v918_v17, 4 }
 0x1c4   : > { %v1175_v24 = vrot.slane %v1174_v11, 1  ;;  %v1094_v25 = vmin.f32 %v1092_v2, %v1093_v13  ;;  %v1192_v34 = vmin.f32 %v1190_v7, %v1191_v21  ;;  %v1109_v35 = vunpack.i.h.bf16 %v1065_v8 }
 0x1c5   : > { %v984_v30 = vmax.f32 %v982_v5, %v983_v19  ;;  %v903_v33 = vrot.slane %v902_v20, 1  ;;  %v1001_v38 = vrot.slane %v1000_v26, 2  ;;  %v920_v40 = vmax.f32 %v918_v17, %v919_v29 }
 0x1c6   : > { %v1176_v36 = vmin.f32 %v1174_v11, %v1175_v24  ;;  %v1095_v37 = vrot.slane %v1094_v25, 1  ;;  %v1193_v43 = vrot.slane %v1192_v34, 2  ;;  %v1110_v45 = vmin.f32 %v1108_v22, %v1109_v35  ;;  %v792_v22 = vpop.permute.xlu0 %791 }
 0x1c7   : > { %v985_v41 = vpack.i.bf16 %v984_v30, %v984_v30  ;;  %v904_v42 = vmax.f32 %v902_v20, %v903_v33  ;;  %v1002_v48 = vmax.f32 %v1000_v26, %v1001_v38  ;;  %v921_v49 = vrot.slane %v920_v40, 2 }
 0x1c8   : > { %v1177_v46 = vpack.i.bf16 %v1176_v36, %v1176_v36  ;;  %v1096_v47 = vmin.f32 %v1094_v25, %v1095_v37  ;;  %v1194_v52 = vmin.f32 %v1192_v34, %v1193_v43  ;;  %v1111_v54 = vrot.slane %v1110_v45, 4 }
 0x1c9   : > { %v1055_v50 = vmax.bf16 %v3554_v9, %v985_v41  ;;  %v905_v51 = vpack.i.bf16 %v904_v42, %v904_v42  ;;  %v1003_v57 = vrot.slane %v1002_v48, 1  ;;  %v922_v58 = vmax.f32 %v920_v40, %v921_v49 }
 0x1ca   : > { %v1247_v55 = vmin.bf16 %v3555_v14, %v1177_v46  ;;  %v1097_v56 = vpack.i.bf16 %v1096_v47, %v1096_v47  ;;  %v1195_v61 = vrot.slane %v1194_v52, 1  ;;  %v1112_v62 = vmin.f32 %v1110_v45, %v1111_v54 }
 0x1cb   : > { %v1265_v59 = vunpack.c.l.bf16 %v1055_v50  ;;  %v1047_v60 = vmax.bf16 %v3554_v9, %v905_v51  ;;  %v4139_v63 = vmax.bf16 %v3554_v9, %v915_v44  ;;  %v4142_v0 = vmin.bf16 %v3555_v14, %v1107_v53 }
 0x1cc   : > { %v1326_v1 = vunpack.c.l.bf16 %v1247_v55  ;;  %v1004_v2 = vmax.f32 %v1002_v48, %v1003_v57  ;;  %v1239_v3 = vmin.bf16 %v3555_v14, %v1097_v56  ;;  %v1196_v4 = vmin.f32 %v1194_v52, %v1195_v61 }
 0x1cd   : > { %v923_v5 = vrot.slane %v922_v58, 1  ;;  %v1113_v6 = vrot.slane %v1112_v62, 2  ;;  %v1256_v7 = vunpack.c.l.bf16 %v4103_v18  ;;  %v1266_v8 = vunpack.c.l.bf16 %v4117_v32  ;;  %v848_v18 = vpop.permute.xlu1 %847 }
 0x1ce   : > { %v1005_v11 = vpack.i.bf16 %v1004_v2, %v1004_v2  ;;  %v1317_v28 = vunpack.c.l.bf16 %v4108_v23  ;;  %v1302_v44 = vsel %vm1288_vm2, %v1265_v59, %v1264_v27  ;;  %v1257_v53 = vunpack.c.l.bf16 %v1047_v60 }
 0x1cf   : > { %v1197_v13 = vpack.i.bf16 %v1196_v4, %v1196_v4  ;;  %v1327_v16 = vunpack.c.l.bf16 %v4122_v39  ;;  %v1258_v17 = vunpack.c.l.bf16 %v4139_v63  ;;  %v1319_v19 = vunpack.c.l.bf16 %v4142_v0 }
 0x1d0   : > { %v1114_v20 = vmin.f32 %v1112_v62, %v1113_v6  ;;  %v1356_v32 = vsel %vm1288_vm2, %v1326_v1, %v1325_v31  ;;  %v1318_v21 = vunpack.c.l.bf16 %v1239_v3  ;;  %v924_v23 = vmax.f32 %v922_v58, %v923_v5  ;;  %v799_v6 = vpop.permute.xlu0 %798 }
 0x1d1   : > { %v882_v10 = vadd.bf16 %v848_v18, %v4085_v12  ;;  %v4159_v27 = vsel %vm1290_vm3, %v1266_v8, %v1302_v44  ;;  %v4162_v39 = vmax.bf16 %v3554_v9, %v1005_v11  ;;  %v1074_v24 = vsub.bf16 %v4085_v12, %v848_v18  ;;  %v855_v46 = vpop.permute.xlu1 %854 }
 0x1d2   : > { %v874_v25 = vadd.bf16 %v792_v22, %v4085_v12  ;;  %v4167_v26 = vsel %vm1288_vm2, %v1257_v53, %v1256_v7  ;;  %v4170_v15 = vmin.bf16 %v3555_v14, %v1197_v13  ;;  %v4173_v30 = vsel %vm1290_vm3, %v1327_v16, %v1356_v32 }
 0x1d3   : > { %v1006_v31 = vunpack.i.l.bf16 %v882_v10  ;;  %v1007_v29 = vunpack.i.h.bf16 %v882_v10  ;;  %v1115_v33 = vrot.slane %v1114_v20, 1  ;;  %v1198_v34 = vunpack.i.l.bf16 %v1074_v24 }
 0x1d4   : > { %v1199_v35 = vunpack.i.h.bf16 %v1074_v24  ;;  %v4176_v36 = vsel %vm1288_vm2, %v1318_v21, %v1317_v28  ;;  %v925_v37 = vpack.i.bf16 %v924_v23, %v924_v23  ;;  %v926_v40 = vunpack.i.l.bf16 %v874_v25 }
 0x1d5   : > { %v1008_v38 = vmax.f32 %v1006_v31, %v1007_v29  ;;  %v1267_v41 = vunpack.c.l.bf16 %v4162_v39  ;;  %v927_v43 = vunpack.i.h.bf16 %v874_v25  ;;  %v1066_v45 = vsub.bf16 %v4085_v12, %v792_v22 }
 0x1d6   : > { %v1200_v42 = vmin.f32 %v1198_v34, %v1199_v35  ;;  %v1328_v47 = vunpack.c.l.bf16 %v4170_v15  ;;  %v883_v49 = vadd.bf16 %v855_v46, %v4085_v12  ;;  %v1075_v50 = vsub.bf16 %v4085_v12, %v855_v46 }
 0x1d7   : > { %v1009_v48 = vrot.slane %v1008_v38, 4  ;;  %v1116_v51 = vmin.f32 %v1114_v20, %v1115_v33  ;;  %v928_v54 = vmax.f32 %v926_v40, %v927_v43  ;;  %v1118_v55 = vunpack.i.l.bf16 %v1066_v45 }
 0x1d8   : > { %v1201_v52 = vrot.slane %v1200_v42, 4  ;;  %v1119_v57 = vunpack.i.h.bf16 %v1066_v45  ;;  %v1016_v58 = vunpack.i.l.bf16 %v883_v49  ;;  %v1017_v59 = vunpack.i.h.bf16 %v883_v49 }
 0x1d9   : > { %v1010_v56 = vmax.f32 %v1008_v38, %v1009_v48  ;;  %v4184_v60 = vmax.bf16 %v3554_v9, %v925_v37  ;;  %v929_v62 = vrot.slane %v928_v54, 4  ;;  %v1208_v1 = vunpack.i.l.bf16 %v1075_v50 }
 0x1da   : > { %v1202_v61 = vmin.f32 %v1200_v42, %v1201_v52  ;;  %v1120_v3 = vmin.f32 %v1118_v55, %v1119_v57  ;;  %v1018_v4 = vmax.f32 %v1016_v58, %v1017_v59  ;;  %v1209_v5 = vunpack.i.h.bf16 %v1075_v50 }
 0x1db   : > { %v1011_v2 = vrot.slane %v1010_v56, 2  ;;  %v1117_v7 = vpack.i.bf16 %v1116_v51, %v1116_v51  ;;  %v930_v11 = vmax.f32 %v928_v54, %v929_v62  ;;  %v875_v28 = vadd.bf16 %v799_v6, %v4085_v12 }
 0x1dc   : > { %v1203_v8 = vrot.slane %v1202_v61, 2  ;;  %v1121_v53 = vrot.slane %v1120_v3, 4  ;;  %v1019_v13 = vrot.slane %v1018_v4, 4  ;;  %v1210_v16 = vmin.f32 %v1208_v1, %v1209_v5 }
 0x1dd   : > { %v1012_v44 = vmax.f32 %v1010_v56, %v1011_v2  ;;  %v931_v18 = vrot.slane %v930_v11, 2  ;;  %v936_v32 = vunpack.i.l.bf16 %v875_v28  ;;  %v937_v21 = vunpack.i.h.bf16 %v875_v28 }
 0x1de   : > { %v1204_v20 = vmin.f32 %v1202_v61, %v1203_v8  ;;  %v1122_v10 = vmin.f32 %v1120_v3, %v1121_v53  ;;  %v1020_v22 = vmax.f32 %v1018_v4, %v1019_v13  ;;  %v1211_v24 = vrot.slane %v1210_v16, 4 }
 0x1df   : > { %v1013_v23 = vrot.slane %v1012_v44, 1  ;;  %v932_v31 = vmax.f32 %v930_v11, %v931_v18  ;;  %v938_v29 = vmax.f32 %v936_v32, %v937_v21  ;;  %v1067_v33 = vsub.bf16 %v4085_v12, %v799_v6 }
 0x1e0   : > { %v1205_v25 = vrot.slane %v1204_v20, 1  ;;  %v1123_v35 = vrot.slane %v1122_v10, 2  ;;  %v1021_v37 = vrot.slane %v1020_v22, 2  ;;  %v1212_v38 = vmin.f32 %v1210_v16, %v1211_v24 }
 0x1e1   : > { %v1014_v34 = vmax.f32 %v1012_v44, %v1013_v23  ;;  %v933_v42 = vrot.slane %v932_v31, 1  ;;  %v939_v43 = vrot.slane %v938_v29, 4  ;;  %v1128_v45 = vunpack.i.l.bf16 %v1067_v33  ;;  %v862_v44 = vpop.permute.xlu1 %861 }
 0x1e2   : > { %v1206_v40 = vmin.f32 %v1204_v20, %v1205_v25  ;;  %v1124_v48 = vmin.f32 %v1122_v10, %v1123_v35  ;;  %v1022_v49 = vmax.f32 %v1020_v22, %v1021_v37  ;;  %v1213_v50 = vrot.slane %v1212_v38, 2 }
 0x1e3   : > { %v1015_v46 = vpack.i.bf16 %v1014_v34, %v1014_v34  ;;  %v934_v52 = vmax.f32 %v932_v31, %v933_v42  ;;  %v940_v54 = vmax.f32 %v938_v29, %v939_v43  ;;  %v1129_v55 = vunpack.i.h.bf16 %v1067_v33 }
 0x1e4   : > { %v1207_v51 = vpack.i.bf16 %v1206_v40, %v1206_v40  ;;  %v1241_v56 = vmin.bf16 %v3555_v14, %v1117_v7  ;;  %v1125_v57 = vrot.slane %v1124_v48, 1  ;;  %v1023_v58 = vrot.slane %v1022_v49, 1 }
 0x1e5   : > { %v1214_v59 = vmin.f32 %v1212_v38, %v1213_v50  ;;  %v1058_v61 = vmax.bf16 %v3554_v9, %v1015_v46  ;;  %v935_v62 = vpack.i.bf16 %v934_v52, %v934_v52  ;;  %v941_v1 = vrot.slane %v940_v54, 2  ;;  %v869_v31 = vpop.permute.xlu1 %868 }
 0x1e6   : > { %v1130_v2 = vmin.f32 %v1128_v45, %v1129_v55  ;;  %v1250_v3 = vmin.bf16 %v3555_v14, %v1207_v51  ;;  %v1126_v4 = vmin.f32 %v1124_v48, %v1125_v57  ;;  %v1024_v5 = vmax.f32 %v1022_v49, %v1023_v58 }
 0x1e7   : > { %v1215_v6 = vrot.slane %v1214_v59, 1  ;;  %v1291_v8 = vsel %vm1290_vm3, %v1258_v17, %v4167_v26  ;;  %v1350_v7 = vsel %vm1290_vm3, %v1319_v19, %v4176_v36  ;;  %v942_v11 = vmax.f32 %v940_v54, %v941_v1 }
 0x1e8   : > { %v1131_v28 = vrot.slane %v1130_v2, 4  ;;  %v1259_v53 = vunpack.c.l.bf16 %v4184_v60  ;;  %v1320_v13 = vunpack.c.l.bf16 %v1241_v56  ;;  %v1050_v16 = vmax.bf16 %v3554_v9, %v935_v62 }
 0x1e9   : > { %v1216_v20 = vmin.f32 %v1214_v59, %v1215_v6  ;;  %v1304_v63 = vsel %vm1292_vm4, %v1267_v41, %v4159_v27  ;;  %v1358_v0 = vsel %vm1292_vm4, %v1328_v47, %v4173_v30  ;;  %v1025_v17 = vpack.i.bf16 %v1024_v5, %v1024_v5  ;;  %v806_v30 = vpop.permute.xlu0 %805 }
 0x1ea   : > { %v1132_v19 = vmin.f32 %v1130_v2, %v1131_v28  ;;  %v1268_v26 = vunpack.c.l.bf16 %v1058_v61  ;;  %v1329_v36 = vunpack.c.l.bf16 %v1250_v3  ;;  %v1127_v18 = vpack.i.bf16 %v1126_v4, %v1126_v4 }
 0x1eb   : > { %v884_v60 = vadd.bf16 %v862_v44, %v4085_v12  ;;  %v1217_v32 = vpack.i.bf16 %v1216_v20, %v1216_v20  ;;  %v943_v21 = vrot.slane %v942_v11, 1  ;;  %v1076_v10 = vsub.bf16 %v4085_v12, %v862_v44 }
 0x1ec   : > { %v1133_v23 = vrot.slane %v1132_v19, 2  ;;  %v1293_v39 = vsel %vm1292_vm4, %v1259_v53, %v1291_v8  ;;  %v4213_v27 = vsel %vm1292_vm4, %v1320_v13, %v1350_v7  ;;  %v1260_v15 = vunpack.c.l.bf16 %v1050_v16 }
 0x1ed   : > { %v1026_v41 = vunpack.i.l.bf16 %v884_v60  ;;  %v4216_v47 = vmax.bf16 %v3554_v9, %v1025_v17  ;;  %v1027_v24 = vunpack.i.h.bf16 %v884_v60  ;;  %v1218_v25 = vunpack.i.l.bf16 %v1076_v10  ;;  %v813_v58 = vpop.permute.xlu0 %812 }
 0x1ee   : > { %v1134_v22 = vmin.f32 %v1132_v19, %v1133_v23  ;;  %v4219_v29 = vsel %vm1294_vm5, %v1268_v26, %v1304_v63  ;;  %v4222_v33 = vsel %vm1294_vm5, %v1329_v36, %v1358_v0  ;;  %v4225_v34 = vmin.bf16 %v3555_v14, %v1127_v18 }
 0x1ef   : > { %v1219_v35 = vunpack.i.h.bf16 %v1076_v10  ;;  %v4228_v37 = vmin.bf16 %v3555_v14, %v1217_v32  ;;  %v944_v38 = vmax.f32 %v942_v11, %v943_v21  ;;  %v1028_v40 = vmax.f32 %v1026_v41, %v1027_v24 }
 0x1f0   : > { %v876_v42 = vadd.bf16 %v806_v30, %v4085_v12  ;;  %v4232_v43 = vsel %vm1294_vm5, %v1260_v15, %v1293_v39  ;;  %v1068_v46 = vsub.bf16 %v4085_v12, %v806_v30  ;;  %v885_v48 = vadd.bf16 %v869_v31, %v4085_v12 }
 0x1f1   : > { %v1220_v45 = vmin.f32 %v1218_v25, %v1219_v35  ;;  %v1269_v49 = vunpack.c.l.bf16 %v4216_v47  ;;  %v1135_v50 = vrot.slane %v1134_v22, 1  ;;  %v1029_v51 = vrot.slane %v1028_v40, 4  ;;  %v639_v47 = vld [vmem:[#allocation2 + $0x8] sm:$0xff] }
 0x1f2   : > { %v946_v52 = vunpack.i.l.bf16 %v876_v42  ;;  %v947_v55 = vunpack.i.h.bf16 %v876_v42  ;;  %v1138_v56 = vunpack.i.l.bf16 %v1068_v46  ;;  %v1139_v57 = vunpack.i.h.bf16 %v1068_v46 }
 0x1f3   : > { %v1221_v54 = vrot.slane %v1220_v45, 4  ;;  %v1330_v59 = vunpack.c.l.bf16 %v4228_v37  ;;  %v945_v61 = vpack.i.bf16 %v944_v38, %v944_v38  ;;  %v1030_v62 = vmax.f32 %v1028_v40, %v1029_v51 }
 0x1f4   : > { %v1036_v1 = vunpack.i.l.bf16 %v885_v48  ;;  %v948_v3 = vmax.f32 %v946_v52, %v947_v55  ;;  %v1140_v4 = vmin.f32 %v1138_v56, %v1139_v57  ;;  %v1037_v5 = vunpack.i.h.bf16 %v885_v48 }
 0x1f5   : > { %v1222_v2 = vmin.f32 %v1220_v45, %v1221_v54  ;;  %v4240_v8 = vmin.f32 %v1134_v22, %v1135_v50  ;;  %v1031_v7 = vrot.slane %v1030_v62, 2  ;;  %v1077_v11 = vsub.bf16 %v4085_v12, %v869_v31 }
 0x1f6   : > { %v877_v28 = vadd.bf16 %v813_v58, %v4085_v12  ;;  %v949_v13 = vrot.slane %v948_v3, 4  ;;  %v1141_v16 = vrot.slane %v1140_v4, 4  ;;  %v1038_v20 = vmax.f32 %v1036_v1, %v1037_v5 }
 0x1f7   : > { %v1223_v53 = vrot.slane %v1222_v2, 2  ;;  %v4249_v17 = vmax.bf16 %v3554_v9, %v945_v61  ;;  %v1032_v19 = vmax.f32 %v1030_v62, %v1031_v7  ;;  %v1228_v26 = vunpack.i.l.bf16 %v1077_v11 }
 0x1f8   : > { %v4238_v6 = vpop.f32.mrb[0].mxu0  ;;  %v1229_v36 = vunpack.i.h.bf16 %v1077_v11  ;;  %v950_v21 = vmax.f32 %v948_v3, %v949_v13  ;;  %v1142_v23 = vmin.f32 %v1140_v4, %v1141_v16  ;;  %v1039_v10 = vrot.slane %v1038_v20, 4 }
 0x1f9   : > { %v2831_v44 = vpop.f32.mrb[1].mxu0  ;;  %v1224_v32 = vmin.f32 %v1222_v2, %v1223_v53  ;;  %v1137_v15 = vpack.i.bf16 %v4240_v8, %v4240_v8  ;;  %v1033_v41 = vrot.slane %v1032_v19, 1  ;;  %v956_v22 = vunpack.i.l.bf16 %v877_v28 }
 0x1fa   : > { %v4244_v63 = vpop.f32.mrb[2].mxu0  ;;  %v4246_v0 = vpop.f32.mrb[0].mxu1  ;;  %v1230_v30 = vmin.f32 %v1228_v26, %v1229_v36  ;;  %v951_v31 = vrot.slane %v950_v21, 2  ;;  %v1143_v35 = vrot.slane %v1142_v23, 2  ;;  %v1040_v38 = vmax.f32 %v1038_v20, %v1039_v10  ;;  %v638_v36 = vld [vmem:[#allocation2] sm:$0xff] }
 0x1fb   : > { %v2832_v18 = vpop.f32.mrb[3].mxu0  ;;  %v2837_v60 = vpop.f32.mrb[1].mxu1  ;;  %v1225_v25 = vrot.slane %v1224_v32, 1  ;;  %v1034_v40 = vmax.f32 %v1032_v19, %v1033_v41  ;;  %v957_v45 = vunpack.i.h.bf16 %v877_v28  ;;  %v1069_v46 = vsub.bf16 %v4085_v12, %v813_v58  ;;  %v694_v41 = vld [vmem:[#allocation3] sm:$0xff] }
 0x1fc   : > { %v4251_v39 = vpop.f32.mrb[2].mxu1  ;;  %v1231_v42 = vrot.slane %v1230_v30, 4  ;;  %v952_v50 = vmax.f32 %v950_v21, %v951_v31  ;;  %v1144_v51 = vmin.f32 %v1142_v23, %v1143_v35  ;;  %v1041_v52 = vrot.slane %v1040_v38, 2 }
 0x1fd   : > { %v2838_v24 = vpop.f32.mrb[3].mxu1  ;;  %v1226_v48 = vmin.f32 %v1224_v32, %v1225_v25  ;;  %v1035_v54 = vpack.i.bf16 %v1034_v40, %v1034_v40  ;;  %v958_v56 = vmax.f32 %v956_v22, %v957_v45  ;;  %v1148_v57 = vunpack.i.l.bf16 %v1069_v46  ;;  %v1255_v45 = vld [vmem:[#allocation4 + $0x8] sm:$0xff] }
 0x1fe   : > { %v1232_v55 = vmin.f32 %v1230_v30, %v1231_v42  ;;  %v953_v62 = vrot.slane %v952_v50, 1  ;;  %v1145_v1 = vrot.slane %v1144_v51, 1  ;;  %v1042_v2 = vmax.f32 %v1040_v38, %v1041_v52 }
 0x1ff   : > { %v1227_v61 = vpack.i.bf16 %v1226_v48, %v1226_v48  ;;  %v1060_v3 = vmax.bf16 %v3554_v9, %v1035_v54  ;;  %v959_v5 = vrot.slane %v958_v56, 4  ;;  %v1149_v8 = vunpack.i.h.bf16 %v1069_v46 }
 0x200   : > { %v1233_v4 = vrot.slane %v1232_v55, 2  ;;  %v954_v58 = vmax.f32 %v952_v50, %v953_v62  ;;  %v1146_v7 = vmin.f32 %v1144_v51, %v1145_v1  ;;  %v1043_v11 = vrot.slane %v1042_v2, 1 }
 0x201   : > { %v1252_v12 = vmin.bf16 %v3555_v14, %v1227_v61  ;;  %v1306_v28 = vsel %vm1296_vm6, %v1269_v49, %v4219_v29  ;;  %v960_v53 = vmax.f32 %v958_v56, %v959_v5  ;;  %v1150_v13 = vmin.f32 %v1148_v57, %v1149_v8 }
 0x202   : > { %v1234_v44 = vmin.f32 %v1232_v55, %v1233_v4  ;;  %v1360_v16 = vsel %vm1296_vm6, %v1330_v59, %v4222_v33  ;;  %v1270_v20 = vunpack.c.l.bf16 %v1060_v3  ;;  %v955_v19 = vpack.i.bf16 %v954_v58, %v954_v58  ;;  %v695_v59 = vld [vmem:[#allocation3 + $0x8] sm:$0xff]  ;;  %v1254_v58 = vld [vmem:[#allocation4] sm:$0xff] }
 0x203   : > { %v1044_v26 = vmax.f32 %v1042_v2, %v1043_v11  ;;  %v1261_v18 = vunpack.c.l.bf16 %v4249_v17  ;;  %v961_v32 = vrot.slane %v960_v53, 2  ;;  %v1151_v21 = vrot.slane %v1150_v13, 4 }
 0x204   : > { %v1235_v60 = vrot.slane %v1234_v44, 1  ;;  %v1243_v29 = vmin.bf16 %v3555_v14, %v1137_v15  ;;  %v1331_v49 = vunpack.c.l.bf16 %v1252_v12  ;;  %v1147_v23 = vpack.i.bf16 %v1146_v7, %v1146_v7 }
 0x205   : > { %v1045_v10 = vpack.i.bf16 %v1044_v26, %v1044_v26  ;;  %v962_v37 = vmax.f32 %v960_v53, %v961_v32  ;;  %v1152_v22 = vmin.f32 %v1150_v13, %v1151_v21  ;;  %v690_v33 = vadd.f32 %v4238_v6, %v638_v36  ;;  %v1315_v13 = vld [vmem:[#allocation5] sm:$0xff] }
 0x206   : > { %v1236_v30 = vmin.f32 %v1234_v44, %v1235_v60  ;;  %v1307_v24 = vsel %vm1298_vm7, %v1270_v20, %v1306_v28  ;;  %v1052_v17 = vmax.bf16 %v3554_v9, %v955_v19  ;;  %v691_v31 = vadd.f32 %v4244_v63, %v639_v47  ;;  %v4297_v19 = vld [vmem:[%s4537_s8] sm:$0xff] (%p608_p9)  ;;  %v4303_v60 = vld [vmem:[%s4537_s8 + $0x8] sm:$0xff] (%p608_p9) }
 0x207   : > { %v1061_v25 = vmax.bf16 %v3554_v9, %v1045_v10  ;;  %v963_v15 = vrot.slane %v962_v37, 1  ;;  %v1153_v38 = vrot.slane %v1152_v22, 2  ;;  %692 = vst [vmem:[#allocation2] sm:$0xff] %v690_v33  ;;  %v737_v40 = vadd.f32 %v4246_v0, %v694_v41  ;;  %v3052_v26 = vld [vmem:[#allocation15 + $0x4] ss:$12 sps:$4 sm:$0xff] (%p608_p9)  }
 0x208   : > { %v1237_v35 = vpack.i.bf16 %v1236_v30, %v1236_v30  ;;  %v1321_v42 = vunpack.c.l.bf16 %v4225_v34  ;;  %v1297_v6 = vsel %vm1296_vm6, %v1261_v18, %v4232_v43  ;;  %693 = vst [vmem:[#allocation2 + $0x8] sm:$0xff] %v691_v31  ;;  %v738_v48 = vadd.f32 %v4251_v39, %v695_v59  ;;  %v1316_v43 = vld [vmem:[#allocation5 + $0x8] sm:$0xff]  ;;  %2071 = vmatprep.subr.bf16.mxu0 (%p608_p9), %v3052_v26  ;;  %v3058_v21 = vld [vmem:[#allocation15 + $0x34] ss:$12 sps:$4 sm:$0xff] (%p608_p9)   ;;  %v3060_v47 = vld [vmem:[#allocation15 + $0x30] ss:$12 sps:$4 sm:$0xff] (%p608_p9)  }
 0x209   : > { %v1271_v46 = vunpack.c.l.bf16 %v1061_v25  ;;  %v1322_v50 = vunpack.c.l.bf16 %v1243_v29  ;;  %v964_v63 = vmax.f32 %v962_v37, %v963_v15  ;;  %v1154_v52 = vmin.f32 %v1152_v22, %v1153_v38  ;;  %739 = vst [vmem:[#allocation3] sm:$0xff] %v737_v40  ;;  %v3054_v36 = vld [vmem:[#allocation15] ss:$12 sps:$4 sm:$0xff] (%p608_p9)   ;;  %v3055_v18 = vld [vmem:[#allocation15 + $0x1c] ss:$12 sps:$4 sm:$0xff] (%p608_p9)  }
 0x20a   : > { %v1253_v51 = vmin.bf16 %v3555_v14, %v1237_v35  ;;  %v1361_v54 = vsel %vm1298_vm7, %v1331_v49, %v1360_v16  ;;  %v1244_v0 = vmin.bf16 %v3555_v14, %v1147_v23  ;;  %v1262_v55 = vunpack.c.l.bf16 %v1052_v17  ;;  %740 = vst [vmem:[#allocation3 + $0x8] sm:$0xff] %v738_v48  ;;  %2072 = vmatpush1.bf16.msra.mxu0 (%p608_p9), %v3054_v36  ;;  %v3057_v32 = vld [vmem:[#allocation15 + $0x18] ss:$12 sps:$4 sm:$0xff] (%p608_p9)   ;;  %v3063_v49 = vld [vmem:[#allocation15 + $0x48] ss:$12 sps:$4 sm:$0xff] (%p608_p9)  }
 0x20b   : > { %v1308_v34 = vsel %vm1300_vm8, %v1271_v46, %v1307_v24  ;;  %v965_v61 = vpack.i.bf16 %v964_v63, %v964_v63  ;;  %v1155_v62 = vrot.slane %v1154_v52, 1  ;;  %v1352_v39 = vsel %vm1294_vm5, %v1321_v42, %v4213_v27  ;;  %2073 = vmatprep.subr.bf16.mxu0 (%p608_p9), %v3055_v18  ;;  %v3061_v29 = vld [vmem:[#allocation15 + $0x4c] ss:$12 sps:$4 sm:$0xff] (%p608_p9)   ;;  %v3064_v23 = vld [vmem:[#allocation15 + $0x64] ss:$12 sps:$4 sm:$0xff] (%p608_p9)  }
 0x20c   : > { %v1312_v56 = vmax.f32 %v1255_v45, %v1308_v34  ;;  %v1332_v57 = vunpack.c.l.bf16 %v1253_v51  ;;  %v1299_v4 = vsel %vm1298_vm7, %v1262_v55, %v1297_v6  ;;  %v1323_v5 = vunpack.c.l.bf16 %v1244_v0  ;;  %v3078_v10 = vld [vmem:[#allocation15 + $0xc8] ss:$12 sps:$4 sm:$0xff] (%p608_p9)   ;;  %v3066_v30 = vld [vmem:[#allocation15 + $0x60] ss:$12 sps:$4 sm:$0xff] (%p608_p9)   ;;  %v3069_v59 = vld [vmem:[#allocation15 + $0x78] ss:$12 sps:$4 sm:$0xff] (%p608_p9)  }
 0x20d   : > { %v1053_v2 = vmax.bf16 %v3554_v9, %v965_v61  ;;  %v1156_v3 = vmin.f32 %v1154_v52, %v1155_v62  ;;  %v1353_v12 = vsel %vm1296_vm6, %v1322_v50, %v1352_v39  ;;  %v3080_v41 = vld [vmem:[#allocation15 + $0x8] ss:$12 sps:$4 sm:$0xff] (%p608_p9)   ;;  %2774 = vmatprep.subr.bf16.mxu1 (%p608_p9), %v3078_v10  ;;  %v3083_v22 = vld [vmem:[#allocation15 + $0xe0] ss:$12 sps:$4 sm:$0xff] (%p608_p9)   ;;  %v3088_v24 = vld [vmem:[#allocation15 + $0xf8] ss:$12 sps:$4 sm:$0xff] (%p608_p9)  }
 0x20e   : > { %1314 = vst [vmem:[#allocation4 + $0x8] sm:$0xff] %v1312_v56  ;;  %v1362_v1 = vsel %vm1300_vm8, %v1332_v57, %v1361_v54  ;;  %v1354_v44 = vsel %vm1298_vm7, %v1323_v5, %v1353_v12  ;;  %2074 = vmatpush1.bf16.msra.mxu0 (%p608_p9), %v3057_v32  ;;  %v3067_v37 = vld [vmem:[#allocation15 + $0x7c] ss:$12 sps:$4 sm:$0xff] (%p608_p9)   ;;  %2775 = vmatpush3.bf16.msra.mxu1 (%p608_p9), %v3080_v41  ;;  %v3085_v33 = vld [vmem:[#allocation15 + $0x20] ss:$12 sps:$4 sm:$0xff] (%p608_p9)   ;;  %v3557_v26 = vmov (%p608_p9), 1  }
 0x20f   : > { %v1366_v8 = vmin.f32 %v1316_v43, %v1362_v1  ;;  %v1157_v7 = vpack.i.bf16 %v1156_v3, %v1156_v3  ;;  %v1263_v11 = vunpack.c.l.bf16 %v1053_v2  ;;  %2075 = vmatprep.subr.bf16.mxu0 (%p608_p9), %v3058_v21  ;;  %2776 = vmatprep.subr.bf16.mxu1 (%p608_p9), %v3083_v22  ;;  %v3070_v17 = vld [vmem:[#allocation15 + $0x94] ss:$12 sps:$4 sm:$0xff] (%p608_p9)   ;;  %v3090_v25 = vld [vmem:[#allocation15 + $0x38] ss:$12 sps:$4 sm:$0xff] (%p608_p9)   ;;  %v3072_v31 = vld [vmem:[#allocation15 + $0x90] ss:$12 sps:$4 sm:$0xff] (%p608_p9)  }
 0x210   : > { %v3093_v35 = vld [vmem:[#allocation15 + $0x110] ss:$12 sps:$4 sm:$0xff] (%p608_p9)   ;;  %v3073_v38 = vld [vmem:[#allocation15 + $0xac] ss:$12 sps:$4 sm:$0xff] (%p608_p9)   ;;  %v3075_v40 = vld [vmem:[#allocation15 + $0xa8] ss:$12 sps:$4 sm:$0xff] (%p608_p9)   ;;  %3049 = vset.pattern.permute.xlu1 (%p608_p9), %v3557_v26 }
 0x211   : > { %1368 = vst [vmem:[#allocation5 + $0x8] sm:$0xff] %v1366_v8  ;;  %v1245_v28 = vmin.bf16 %v3555_v14, %v1157_v7  ;;  %v1301_v27 = vsel %vm1300_vm8, %v1263_v11, %v1299_v4  ;;  %v3556_v14 = vmov (%p608_p9), 0   ;;  %v3095_v15 = vld [vmem:[#allocation15 + $0x50] ss:$12 sps:$4 sm:$0xff] (%p608_p9)   ;;  %v3098_v42 = vld [vmem:[#allocation15 + $0x128] ss:$12 sps:$4 sm:$0xff] (%p608_p9)   ;;  %2348 = vperm.xlu1 (%p608_p9), %3049, %v4297_v19  }
 0x212   : > { %v1311_v53 = vmax.f32 %v1254_v58, %v1301_v27  ;;  %1370 = sbr.rel (!%p608_p9) target bundleno = 957 (0x3bd), region = 88  ;;  %3048 = vset.pattern.permute.xlu0 (%p608_p9), %v3556_v14  ;;  %2076 = vmatpush1.bf16.msra.mxu0 (%p608_p9), %v3060_v47  ;;  %v3076_v6 = vld [vmem:[#allocation15 + $0xc4] ss:$12 sps:$4 sm:$0xff] (%p608_p9)   ;;  %v3100_v45 = vld [vmem:[#allocation15 + $0x68] ss:$12 sps:$4 sm:$0xff] (%p608_p9)   ;;  %v3558_v36 = vmov (%p608_p9), 2  }
 0x213   : > { %v1324_v9 = vunpack.c.l.bf16 %v1245_v28  ;;  %1395 = vperm.xlu0 (%p608_p9), %3048, %v4297_v19   ;;  %2077 = vmatprep.subr.bf16.mxu0 (%p608_p9), %v3061_v29  ;;  %v3103_v46 = vld [vmem:[#allocation15 + $0x140] ss:$12 sps:$4 sm:$0xff] (%p608_p9)   ;;  %v3081_v51 = vld [vmem:[#allocation15 + $0xdc] ss:$12 sps:$4 sm:$0xff] (%p608_p9)   ;;  %v3108_v63 = vld [vmem:[#allocation15 + $0x158] ss:$12 sps:$4 sm:$0xff] (%p608_p9)  }
 0x214   : > { %1313 = vst [vmem:[#allocation4] sm:$0xff] %v1311_v53  ;;  %2777 = vmatpush3.bf16.msra.mxu1 (%p608_p9), %v3085_v33  ;;  %v3079_v48 = vld [vmem:[#allocation15 + $0xc0] ss:$12 sps:$4 sm:$0xff] (%p608_p9)   ;;  %v3084_v52 = vld [vmem:[#allocation15 + $0xd8] ss:$12 sps:$4 sm:$0xff] (%p608_p9)  }
 0x215   : > { %v1355_v16 = vsel %vm1300_vm8, %v1324_v9, %v1354_v44  ;;  %2778 = vmatprep.subr.bf16.mxu1 (%p608_p9), %v3088_v24  ;;  %v3105_v50 = vld [vmem:[#allocation15 + $0x80] ss:$12 sps:$4 sm:$0xff] (%p608_p9)   ;;  %v3110_v54 = vld [vmem:[#allocation15 + $0x98] ss:$12 sps:$4 sm:$0xff] (%p608_p9)   ;;  %v3113_v55 = vld [vmem:[#allocation15 + $0x170] ss:$12 sps:$4 sm:$0xff] (%p608_p9)   ;;  %2352 = vperm.xlu1 (%p608_p9), %3049, %v4303_v60  }
 0x216   : > { %v1365_v20 = vmin.f32 %v1315_v13, %v1355_v16  ;;  %2078 = vmatpush1.bf16.msra.mxu0 (%p608_p9), %v3063_v49  ;;  %v3086_v0 = vld [vmem:[#allocation15 + $0xf4] ss:$12 sps:$4 sm:$0xff] (%p608_p9)   ;;  %v3089_v34 = vld [vmem:[#allocation15 + $0xf0] ss:$12 sps:$4 sm:$0xff] (%p608_p9)   ;;  %v3091_v39 = vld [vmem:[#allocation15 + $0x10c] ss:$12 sps:$4 sm:$0xff] (%p608_p9)  }
 0x217   : > { %1400 = vperm.xlu0 (%p608_p9), %3048, %v4303_v60   ;;  %2079 = vmatprep.subr.bf16.mxu0 (%p608_p9), %v3064_v23  ;;  %v1371_v43 = vld [vmem:[%s4071_s4] sm:$0xff] (%p608_p9)  ;;  %v4308_v56 = vld [vmem:[%s4071_s4 + $0x8] sm:$0xff] (%p608_p9)  ;;  %v1377_v21 = vld [vmem:[#allocation3] sm:$0xff] (%p608_p9) }
 0x218   : > { %1367 = vst [vmem:[#allocation5] sm:$0xff] %v1365_v20  ;;  %2779 = vmatpush3.bf16.msra.mxu1 (%p608_p9), %v3090_v25  ;;  %v3115_v57 = vld [vmem:[#allocation15 + $0xb0] ss:$12 sps:$4 sm:$0xff] (%p608_p9)   ;;  %v3119_v3 = vld [vmem:[#allocation15 + $0x248] ss:$12 sps:$4 sm:$0xff] (%p608_p9)   ;;  %v1379_v32 = vmul.f32 (%p608_p9), %v1371_v43, %v1371_v43  ;;  %v1380_v23 = vmul.f32 (%p608_p9), %v4308_v56, %v4308_v56 }
 0x219   : > { %2780 = vmatprep.subr.bf16.mxu1 %v3093_v35  ;;  %v1384_v62 = vld [vmem:[#allocation4 + $0x8] sm:$0xff]  ;;  %v3096_v8 = vld [vmem:[#allocation15 + $0x124] ss:$12 sps:$4 sm:$0xff]   ;;  %v3099_v12 = vld [vmem:[#allocation15 + $0x120] ss:$12 sps:$4 sm:$0xff]   ;;  %3051 = vset.pattern.permute.xlu1 %v3558_v36 }
 0x21a   : > { %2080 = vmatpush1.bf16.msra.mxu0 %v3066_v30  ;;  %v1386_v2 = vmax.f32 %v1384_v62, %v4308_v56  ;;  %v3094_v5 = vld [vmem:[#allocation15 + $0x108] ss:$12 sps:$4 sm:$0xff]   ;;  %v3104_v7 = vld [vmem:[#allocation15 + $0x138] ss:$12 sps:$4 sm:$0xff]   ;;  %v3109_v28 = vld [vmem:[#allocation15 + $0x150] ss:$12 sps:$4 sm:$0xff]   ;;  %2364 = vperm.xlu1 %3051, %v4303_v60   ;;  %v1381_v49 = vadd.f32 %v1379_v32, %v1377_v21 }
 0x21b   : > { %2081 = vmatprep.subr.bf16.mxu0 %v3067_v37  ;;  %v1383_v61 = vld [vmem:[#allocation4] sm:$0xff]  ;;  %v3101_v58 = vld [vmem:[#allocation15 + $0x13c] ss:$12 sps:$4 sm:$0xff]   ;;  %3050 = vset.pattern.permute.xlu0 %v3558_v36 }
 0x21c   : > { %2781 = vmatpush3.bf16.msra.mxu1 %v3095_v15  ;;  %v1385_v1 = vmax.f32 %v1383_v61, %v1371_v43  ;;  %v3106_v11 = vld [vmem:[#allocation15 + $0x154] ss:$12 sps:$4 sm:$0xff]   ;;  %v3111_v27 = vld [vmem:[#allocation15 + $0x16c] ss:$12 sps:$4 sm:$0xff]   ;;  %v3118_v53 = vld [vmem:[#allocation15 + $0x184] ss:$12 sps:$4 sm:$0xff]   ;;  %2360 = vperm.xlu0 %3050, %v4297_v19  }
 0x21d   : > { %2782 = vmatprep.subr.bf16.mxu1 %v3098_v42  ;;  %v3114_v44 = vld [vmem:[#allocation15 + $0x168] ss:$12 sps:$4 sm:$0xff]   ;;  %v3124_v42 = vld [vmem:[#allocation15 + $0x260] ss:$12 sps:$4 sm:$0xff]   ;;  %v3154_v26 = vld [vmem:[#allocation15 + $0x2f0] ss:$12 sps:$4 sm:$0xff]  }
 0x21e   : > { %2082 = vmatpush1.bf16.msra.mxu0 %v3069_v59  ;;  %v1428_v4 = vpack.c.bf16 %v1386_v2, %v1385_v1  ;;  %v1388_v9 = vld [vmem:[#allocation5 + $0x8] sm:$0xff]  ;;  %v1373_v18 = vld [vmem:[#allocation2] sm:$0xff]  ;;  %v1374_v29 = vld [vmem:[#allocation2 + $0x8] sm:$0xff] }
 0x21f   : > { %2083 = vmatprep.subr.bf16.mxu0 %v3070_v17  ;;  %v1387_v13 = vld [vmem:[#allocation5] sm:$0xff]  ;;  %v1390_v20 = vmin.f32 %v1388_v9, %v4308_v56  ;;  %v1375_v47 = vadd.f32 %v1373_v18, %v1371_v43  ;;  %v1378_v41 = vld [vmem:[#allocation3 + $0x8] sm:$0xff]  ;;  %v1376_v37 = vadd.f32 %v1374_v29, %v4308_v56  ;;  %v3559_v29 = vmov 0.0  }
 0x220   : > { %2783 = vmatpush3.bf16.msra.mxu1 %v3100_v45  ;;  %2103 = vmatprep.mubr.bf16.mxu0 %v1428_v4  ;;  %v1389_v16 = vmin.f32 %v1387_v13, %v1371_v43  ;;  %v1382_v33 = vadd.f32 %v1380_v23, %v1378_v41  ;;  %v3116_v17 = vld [vmem:[#allocation15 + $0x180] ss:$12 sps:$4 sm:$0xff]   ;;  %v3120_v25 = vld [vmem:[#allocation15 + $0x188] ss:$12 sps:$4 sm:$0xff]   ;;  %v3121_v45 = vld [vmem:[#allocation15 + $0x198] ss:$12 sps:$4 sm:$0xff]  }
 0x221   : > { %2784 = vmatprep.subr.bf16.mxu1 %v3103_v46  ;;  %2189 = vmatprep.mubr.bf16.mxu1 %v1428_v4  ;;  %v3125_v46 = vld [vmem:[#allocation15 + $0x1a0] ss:$12 sps:$4 sm:$0xff]   ;;  %v3138_v56 = vld [vmem:[#allocation15 + $0x1e4] ss:$12 sps:$4 sm:$0xff]   ;;  %v3143_v2 = vld [vmem:[#allocation15 + $0x1fc] ss:$12 sps:$4 sm:$0xff]  }
 0x222   : > { %2084 = vmatpush1.bf16.msra.mxu0 %v3072_v31  ;;  %v4312_v14 = vpack.c.bf16 %v1390_v20, %v1389_v16  ;;  %v3136_v62 = vld [vmem:[#allocation15 + $0x1e0] ss:$12 sps:$4 sm:$0xff]   ;;  %v3149_v13 = vld [vmem:[#allocation15 + $0x2d8] ss:$12 sps:$4 sm:$0xff]   ;;  %v3146_v9 = vld [vmem:[#allocation15 + $0x210] ss:$12 sps:$4 sm:$0xff]  }
 0x223   : > { %2085 = vmatprep.subr.bf16.mxu0 %v3073_v38  ;;  %v3150_v16 = vld [vmem:[#allocation15 + $0x218] ss:$12 sps:$4 sm:$0xff]   ;;  %v3151_v36 = vld [vmem:[#allocation15 + $0x228] ss:$12 sps:$4 sm:$0xff]   ;;  %v3155_v18 = vld [vmem:[#allocation15 + $0x230] ss:$12 sps:$4 sm:$0xff]  }
 0x224   : > { %2785 = vmatpush3.bf16.msra.mxu1 %v3105_v50  ;;  %v3128_v50 = vld [vmem:[#allocation15 + $0x1b4] ss:$12 sps:$4 sm:$0xff]   ;;  %v3153_v20 = vld [vmem:[#allocation15 + $0x22c] ss:$12 sps:$4 sm:$0xff]   ;;  %v3158_v32 = vld [vmem:[#allocation15 + $0x244] ss:$12 sps:$4 sm:$0xff]  }
 0x225   : > { %2786 = vmatprep.subr.bf16.mxu1 %v3108_v63  ;;  %v3126_v63 = vld [vmem:[#allocation15 + $0x1b0] ss:$12 sps:$4 sm:$0xff]   ;;  %v3156_v21 = vld [vmem:[#allocation15 + $0x240] ss:$12 sps:$4 sm:$0xff]   ;;  %v3160_v23 = vld [vmem:[#allocation15 + $0x258] ss:$12 sps:$4 sm:$0xff]  }
 0x226   : > { %2086 = vmatpush1.bf16.msra.mxu0 %v3075_v40  ;;  %v3123_v40 = vld [vmem:[#allocation15 + $0x19c] ss:$12 sps:$4 sm:$0xff]   ;;  %v3166_v41 = vld [vmem:[#allocation15 + $0x274] ss:$12 sps:$4 sm:$0xff]  }
 0x227   : > { %2087 = vmatprep.subr.bf16.mxu0 %v3076_v6 }
 0x228   : > { %2787 = vmatpush3.bf16.msra.mxu1 %v3110_v54  ;;  %v3133_v54 = vld [vmem:[#allocation15 + $0x1cc] ss:$12 sps:$4 sm:$0xff]  }
 0x229   : > { %2788 = vmatprep.subr.bf16.mxu1 %v3113_v55  ;;  %v3131_v55 = vld [vmem:[#allocation15 + $0x1c8] ss:$12 sps:$4 sm:$0xff]  }
 0x22a   : > { %2088 = vmatpush1.bf16.msra.mxu0 %v3079_v48 }
 0x22b   : > { %2089 = vmatprep.subr.bf16.mxu0 %v3081_v51  ;;  %v3129_v51 = vld [vmem:[#allocation15 + $0x278] ss:$12 sps:$4 sm:$0xff]  }
 0x22c   : > { %2789 = vmatpush3.bf16.msra.mxu1 %v3115_v57  ;;  %v3139_v57 = vld [vmem:[#allocation15 + $0x2a8] ss:$12 sps:$4 sm:$0xff]  }
 0x22d   : > { %2796 = vmatprep.subr.bf16.mxu1 %v3119_v3  ;;  %v3144_v3 = vld [vmem:[#allocation15 + $0x2c0] ss:$12 sps:$4 sm:$0xff]  }
 0x22e   : > { %2090 = vmatpush1.bf16.msra.mxu0 %v3084_v52  ;;  %v3130_v52 = vld [vmem:[#allocation15 + $0x1b8] ss:$12 sps:$4 sm:$0xff]  }
 0x22f   : > { %2091 = vmatprep.subr.bf16.mxu0 %v3086_v0  ;;  %v3134_v0 = vld [vmem:[#allocation15 + $0x290] ss:$12 sps:$4 sm:$0xff]  }
 0x232   : > { %2092 = vmatpush1.bf16.msra.mxu0 %v3089_v34  ;;  %v3135_v34 = vld [vmem:[#allocation15 + $0x1d0] ss:$12 sps:$4 sm:$0xff]  }
 0x233   : > { %2093 = vmatprep.subr.bf16.mxu0 %v3091_v39  ;;  %v3140_v39 = vld [vmem:[#allocation15 + $0x1e8] ss:$12 sps:$4 sm:$0xff]  }
 0x236   : > { %2094 = vmatpush1.bf16.msra.mxu0 %v3094_v5 }
 0x237   : > { %2095 = vmatprep.subr.bf16.mxu0 %v3096_v8 }
 0x23a   : > { %2096 = vmatpush1.bf16.msra.mxu0 %v3099_v12 }
 0x23b   : > { %2097 = vmatprep.subr.bf16.mxu0 %v3101_v58  ;;  %v3141_v58 = vld [vmem:[#allocation15 + $0x1f8] ss:$12 sps:$4 sm:$0xff]  }
 0x23e   : > { %2098 = vmatpush1.bf16.msra.mxu0 %v3104_v7  ;;  %v3145_v7 = vld [vmem:[#allocation15 + $0x200] ss:$12 sps:$4 sm:$0xff]  }
 0x23f   : > { %2099 = vmatprep.subr.bf16.mxu0 %v3106_v11 }
 0x242   : > { %2100 = vmatpush1.bf16.msra.mxu0 %v3109_v28 }
 0x243   : > { %2101 = vmatprep.subr.bf16.mxu0 %v3111_v27 }
 0x246   : > { %2102 = vmatpush1.bf16.msra.mxu0 %v3114_v44 }
 0x247   : > { %2114 = vmatprep.subr.bf16.mxu0 %v3118_v53  ;;  %v3148_v53 = vld [vmem:[#allocation15 + $0x214] ss:$12 sps:$4 sm:$0xff]  }
 0x292   : > { %v1396_v10 = vpop.permute.xlu0 %1395 }
 0x293   : > { %v1403_v30 = vmul.f32 %v1396_v10, %v1375_v47  ;;  %v1405_v19 = vmul.f32 %v1396_v10, %v1381_v49  ;;  %v3159_v47 = vld [vmem:[#allocation14] sm:$0xff]   ;;  %v3162_v49 = vld [vmem:[#allocation15 + $0x25c] ss:$12 sps:$4 sm:$0xff]  }
 0x294   : > { %v3163_v10 = vld [vmem:[#allocation14 + $0x8] sm:$0xff]  }
 0x295   : > { %v1407_v22 = vmul.f32 %v1403_v30, %v1403_v30 }
 0x296   : > { %v1401_v59 = vpop.permute.xlu0 %1400 }
 0x297   : > { %v1409_v24 = vsub.f32 %v1405_v19, %v1407_v22  ;;  %v1404_v60 = vmul.f32 %v1401_v59, %v1376_v37  ;;  %v1406_v35 = vmul.f32 %v1401_v59, %v1382_v33  ;;  %v3167_v37 = vld [vmem:[#allocation14 + $0x10] sm:$0xff]   ;;  %v3170_v19 = vld [vmem:[#allocation15 + $0x28c] ss:$12 sps:$4 sm:$0xff]  }
 0x298   : > { %v3168_v22 = vld [vmem:[#allocation15 + $0x288] ss:$12 sps:$4 sm:$0xff]   ;;  %v3171_v33 = vld [vmem:[#allocation14 + $0x18] sm:$0xff]   ;;  %v3174_v59 = vld [vmem:[#allocation15 + $0x2a4] ss:$12 sps:$4 sm:$0xff]  }
 0x299   : > { %v4321_v31 = vmax.f32 %v1409_v24, 1e-06  ;;  %v1408_v15 = vmul.f32 %v1404_v60, %v1404_v60  ;;  %v1427_v38 = vpack.c.bf16 %v1404_v60, %v1403_v30  ;;  %v3164_v30 = vld [vmem:[#allocation15 + $0x270] ss:$12 sps:$4 sm:$0xff]   ;;  %v3172_v24 = vld [vmem:[#allocation15 + $0x2a0] ss:$12 sps:$4 sm:$0xff]  }
 0x29a   : > { %v3175_v60 = vld [vmem:[#allocation14 + $0x20] sm:$0xff]  }
 0x29b   : > { %3188 = vrsqrt.f32 %v4321_v31  ;;  %v1410_v6 = vsub.f32 %v1406_v35, %v1408_v15  ;;  %2104 = vmatmul.mubr.bf16.vlgmr.msra.gmra.mrb[0].mxu0 %v1427_v38  ;;  %2190 = vmatmul.mubr.bf16.vlgmr.msra.gmra.mrb[0].mxu1 %v1427_v38  ;;  %vm1415_vm9 = vcmp.eq.f32.partialorder %v4321_v31, inf  ;;  %v1418_v8 = vand.u32 2147483648, %v4321_v31  ;;  %v3182_v35 = vld [vmem:[#allocation15 + $0x2d4] ss:$12 sps:$4 sm:$0xff]   ;;  %v3180_v15 = vld [vmem:[#allocation15 + $0x2d0] ss:$12 sps:$4 sm:$0xff]  }
 0x29c   : > { %2115 = vmatpush1.bf16.msra.mxu0 %v3116_v17  ;;  %2797 = vmatpush3.bf16.msra.mxu1 %v3120_v25  ;;  %vm1417_vm11 = vcmp.eq.f32.partialorder %v4321_v31, 0.0  ;;  %v3178_v17 = vld [vmem:[#allocation15 + $0x2bc] ss:$12 sps:$4 sm:$0xff]   ;;  %v3176_v25 = vld [vmem:[#allocation15 + $0x2b8] ss:$12 sps:$4 sm:$0xff]   ;;  %v3183_v38 = vld [vmem:[#allocation14 + $0x30] sm:$0xff]  }
 0x29d   : > { %v1412_v48 = vmax.f32 %v1410_v6, 1e-06  ;;  %2116 = vmatprep.subr.bf16.mxu0 %v3123_v40  ;;  %2798 = vmatprep.subr.bf16.mxu1 %v3124_v42  ;;  %v3186_v40 = vld [vmem:[#allocation15 + $0x2ec] ss:$12 sps:$4 sm:$0xff]   ;;  %v3184_v42 = vld [vmem:[#allocation15 + $0x2e8] ss:$12 sps:$4 sm:$0xff]  }
 0x29e   : > { %v3187_v6 = vld [vmem:[#allocation14 + $0x38] sm:$0xff]  }
 0x29f   : > { %3190 = vrsqrt.f32 %v1412_v48  ;;  %vm1422_vm10 = vcmp.eq.f32.partialorder %v1412_v48, inf  ;;  %v1425_v12 = vand.u32 2147483648, %v1412_v48  ;;  %vm1424_vm12 = vcmp.eq.f32.partialorder %v1412_v48, 0.0 }
 0x2a0   : > { %2117 = vmatpush1.bf16.msra.mxu0 %v3121_v45  ;;  %2799 = vmatpush3.bf16.msra.mxu1 %v3125_v46  ;;  %v2239_v45 = vld [vmem:[%s492_s29] sm:$0xff]  ;;  %v2240_v46 = vld [vmem:[%s492_s29 + $0x8] sm:$0xff] }
 0x2a1   : > { %2118 = vmatprep.subr.bf16.mxu0 %v3128_v50  ;;  %2800 = vmatprep.subr.bf16.mxu1 %v3129_v51 }
 0x2a4   : > { %2119 = vmatpush1.bf16.msra.mxu0 %v3126_v63  ;;  %2801 = vmatpush3.bf16.msra.mxu1 %v3130_v52 }
 0x2a5   : > { %v3189_v43 = vpop.eup %3188  ;;  %2120 = vmatprep.subr.bf16.mxu0 %v3133_v54  ;;  %2802 = vmatprep.subr.bf16.mxu1 %v3134_v0 }
 0x2a6   : > { %v1414_v61 = vmul.f32 %v3189_v43, %v4321_v31 }
 0x2a8   : > { %2121 = vmatpush1.bf16.msra.mxu0 %v3131_v55  ;;  %2803 = vmatpush3.bf16.msra.mxu1 %v3135_v34  ;;  %v1416_v4 = vsel %vm1415_vm9, %v4321_v31, %v1414_v61  ;;  %v3179_v31 = vld [vmem:[#allocation14 + $0x28] sm:$0xff]  }
 0x2a9   : > { %v3191_v1 = vpop.eup %3190  ;;  %2122 = vmatprep.subr.bf16.mxu0 %v3138_v56  ;;  %2804 = vmatprep.subr.bf16.mxu1 %v3139_v57  ;;  %v1419_v28 = vsel %vm1417_vm11, %v1418_v8, %v1416_v4 }
 0x2aa   : > { %v1421_v5 = vmul.f32 %v3191_v1, %v1412_v48  ;;  %v2349_v1 = vpop.permute.xlu1 %2348 }
 0x2ac   : > { %2123 = vmatpush1.bf16.msra.mxu0 %v3136_v62  ;;  %2805 = vmatpush3.bf16.msra.mxu1 %v3140_v39  ;;  %v1423_v11 = vsel %vm1422_vm10, %v1412_v48, %v1421_v5  ;;  %v2241_v48 = vpack.c.bf16 %v2240_v46, %v2239_v45 }
 0x2ad   : > { %2124 = vmatprep.subr.bf16.mxu0 %v3143_v2  ;;  %2806 = vmatprep.subr.bf16.mxu1 %v3144_v3  ;;  %v1426_v27 = vsel %vm1424_vm12, %v1425_v12, %v1423_v11  ;;  %v2361_v3 = vpop.permute.xlu0 %2360 }
 0x2ae   : > { %v1430_v44 = vpack.c.bf16 %v1426_v27, %v1419_v28  ;;  %v2353_v2 = vpop.permute.xlu1 %2352 }
 0x2b0   : > { %2125 = vmatpush1.bf16.msra.mxu0 %v3141_v58  ;;  %2807 = vmatpush3.bf16.msra.mxu1 %v3145_v7 }
 0x2b1   : > { %2146 = vmatprep.mubr.bf16.mxu0 %v1430_v44  ;;  %2230 = vmatprep.mubr.bf16.mxu1 %v1430_v44 }
 0x2b2   : > { %2126 = vmatprep.subr.bf16.mxu0 %v3148_v53  ;;  %2808 = vmatprep.subr.bf16.mxu1 %v3149_v13  ;;  %v2365_v4 = vpop.permute.xlu1 %2364 }
 0x2b4   : > { %2127 = vmatpush1.bf16.msra.mxu0 %v3146_v9  ;;  %2809 = vmatpush3.bf16.msra.mxu1 %v3150_v16 }
 0x2b5   : > { %2128 = vmatprep.subr.bf16.mxu0 %v3153_v20  ;;  %2810 = vmatprep.subr.bf16.mxu1 %v3154_v26  ;;  %v2757_v20 = vld [vmem:[%s4538_s27] ss:$0 sm:$0xff] }
 0x2b8   : > { %2129 = vmatpush1.bf16.msra.mxu0 %v3151_v36  ;;  %2811 = vmatpush3.bf16.msra.mxu1 %v3155_v18 }
 0x2b9   : > { %2130 = vmatprep.subr.bf16.mxu0 %v3158_v32  ;;  %2839 = vmatprep.subr.bf16.mxu1 %v3559_v29 }
 0x2bb   : > { %2231 = vmatmul.mubr.bf16.vlgmr.msra.gmra.mrb[4].mxu1 %v4312_v14 }
 0x2bc   : > { %2131 = vmatpush1.bf16.msra.mxu0 %v3156_v21  ;;  %2840 = vmatpush3.bf16.msra.mxu1 %v3159_v47 }
 0x2bd   : > { %2132 = vmatprep.subr.bf16.mxu0 %v3162_v49  ;;  %2841 = vmatprep.subr.bf16.mxu1 %v3559_v29 }
 0x2be   : > { %2855 = vmatprep.mubr.msk.bf16.mxu1 %vm3560_vm13, %v3559_v29 }
 0x2c0   : > { %2133 = vmatpush1.bf16.msra.mxu0 %v3160_v23  ;;  %2842 = vmatpush3.bf16.msra.mxu1 %v3163_v10 }
 0x2c1   : > { %2134 = vmatprep.subr.bf16.mxu0 %v3166_v41  ;;  %2843 = vmatprep.subr.bf16.mxu1 %v3559_v29 }
 0x2c4   : > { %2135 = vmatpush1.bf16.msra.mxu0 %v3164_v30  ;;  %2844 = vmatpush3.bf16.msra.mxu1 %v3167_v37 }
 0x2c5   : > { %2136 = vmatprep.subr.bf16.mxu0 %v3170_v19  ;;  %2845 = vmatprep.subr.bf16.mxu1 %v3559_v29 }
 0x2c8   : > { %2137 = vmatpush1.bf16.msra.mxu0 %v3168_v22  ;;  %2846 = vmatpush3.bf16.msra.mxu1 %v3171_v33 }
 0x2c9   : > { %2138 = vmatprep.subr.bf16.mxu0 %v3174_v59  ;;  %2847 = vmatprep.subr.bf16.mxu1 %v3559_v29 }
 0x2cc   : > { %2139 = vmatpush1.bf16.msra.mxu0 %v3172_v24  ;;  %2848 = vmatpush3.bf16.msra.mxu1 %v3175_v60 }
 0x2cd   : > { %2140 = vmatprep.subr.bf16.mxu0 %v3178_v17  ;;  %2849 = vmatprep.subr.bf16.mxu1 %v3559_v29 }
 0x2d0   : > { %2141 = vmatpush1.bf16.msra.mxu0 %v3176_v25  ;;  %2850 = vmatpush3.bf16.msra.mxu1 %v3179_v31 }
 0x2d1   : > { %2142 = vmatprep.subr.bf16.mxu0 %v3182_v35  ;;  %2851 = vmatprep.subr.bf16.mxu1 %v3559_v29 }
 0x2d4   : > { %2143 = vmatpush1.bf16.msra.mxu0 %v3180_v15  ;;  %2852 = vmatpush3.bf16.msra.mxu1 %v3183_v38 }
 0x2d5   : > { %2144 = vmatprep.subr.bf16.mxu0 %v3186_v40  ;;  %2853 = vmatprep.subr.bf16.mxu1 %v3559_v29 }
 0x2d8   : > { %2145 = vmatpush1.bf16.msra.mxu0 %v3184_v42  ;;  %2854 = vmatpush3.bf16.msra.mxu1 %v3187_v6 }
 0x2db   : > { %2147 = vmatmul.mubr.bf16.vlgmr.msra.gmra.mrb[0].mxu0 %v4312_v14  ;;  %2856 = vmatmul.mubr.bf16.vlgmr.msra.gmra.mrb[8].mxu1 %v2241_v48 }
 0x36e   : > { %v2790_v50 = vpop.f32.mrb[0].mxu1 }
 0x36f   : > { %v2791_v51 = vpop.f32.mrb[1].mxu1 }
 0x370   : > { %v2792_v63 = vadd.f32 %v2791_v51, %v2790_v50  ;;  %v2793_v52 = vpop.f32.mrb[2].mxu1 }
 0x371   : > { %v2794_v54 = vpop.f32.mrb[3].mxu1 }
 0x372   : > { %v2795_v0 = vadd.f32 %v2794_v54, %v2793_v52 }
 0x38e   : > { %v2812_v55 = vpop.f32.mrb[4].mxu1 }
 0x38f   : > { %v2813_v34 = vpop.f32.mrb[5].mxu1 }
 0x390   : > { %v2814_v43 = vadd.f32 %v2813_v34, %v2812_v55  ;;  %v2815_v56 = vpop.f32.mrb[6].mxu1 }
 0x391   : > { %v2816_v57 = vpop.f32.mrb[7].mxu1 }
 0x392   : > { %v2817_v61 = vadd.f32 %v2816_v57, %v2815_v56  ;;  %v2233_v62 = vadd.f32 %v2814_v43, %v2792_v63 }
 0x394   : > { %v2236_v39 = vadd.f32 %v2817_v61, %v2795_v0  ;;  %v2367_v13 = vmul.f32 %v2361_v3, %v2233_v62 }
 0x396   : > { %v2368_v26 = vmul.f32 %v2365_v4, %v2236_v39 }
 0x3ae   : > { %v2148_v14 = vpop.f32.mrb[0].mxu0  ;;  %v2340_v5 = vpop.f32.mrb[8].mxu1 }
 0x3af   : > { %v2341_v8 = vadd.f32 %v2340_v5, %v2148_v14  ;;  %v2150_v12 = vpop.f32.mrb[1].mxu0  ;;  %v2857_v58 = vpop.f32.mrb[9].mxu1 }
 0x3b0   : > { %v2355_v7 = vmul.f32 %v2349_v1, %v2150_v12  ;;  %v2152_v11 = vpop.f32.mrb[2].mxu0  ;;  %v2343_v28 = vpop.f32.mrb[10].mxu1 }
 0x3b1   : > { %v2344_v27 = vadd.f32 %v2343_v28, %v2152_v11  ;;  %v2154_v44 = vpop.f32.mrb[3].mxu0  ;;  %v2858_v53 = vpop.f32.mrb[11].mxu1 }
 0x3b2   : > { %v2357_v9 = vadd.f32 %v2355_v7, %v2341_v8  ;;  %v2356_v16 = vmul.f32 %v2353_v2, %v2154_v44 }
 0x3b4   : > { %v2369_v36 = vadd.f32 %v2367_v13, %v2357_v9  ;;  %v2358_v18 = vadd.f32 %v2356_v16, %v2344_v27 }
 0x3b6   : > { %v2378_v32 = vadd.f32 %v2757_v20, %v2369_v36  ;;  %v2370_v21 = vadd.f32 %v2368_v26, %v2358_v18 }
 0x3b8   : > { %v2380_v47 = vmax.f32 %v2378_v32, 0.0  ;;  %v2379_v29 = vadd.f32 %v2757_v20, %v2370_v21 }
 0x3ba   : > { %2382 = vst [vmem:[%s4074_s19] sm:$0xff] %v2380_v47  ;;  %v2381_v49 = vmax.f32 %v2379_v29, 0.0 }
 0x3bc   : > { %2383 = vst [vmem:[%s4074_s19 + $0x8] sm:$0xff] %v2381_v49 }
 0x3bd PF: > { %s4539_s0 = sld [smem:[#allocation28_spill]]  ;;  %s4540_s7 = sld [smem:[#allocation30_spill]] }
 0x3be   : > { %s4541_s4 = sld [smem:[#allocation42_spill]]  ;;  %s2400_s24 = sshll.u32 %s4074_s19, 4  ;;  %s4347_s24 = int_to_ptr.vmem [resolvable:$true] %s2400_s24 }
 0x3bf   : > { %s2385_s15 = scalar_lea.sflag [#allocation8], %s4024_s28  ;;  %s3368_s5 = scalar_lea.vmem %s4347_s24, 256 }
 0x3c0   : > { %p3369_p7 = scmp.ne.s32.totalorder %s4347_s24, %s3368_s5  ;;  %s3561_s6 = smov [#allocation17]  }
 0x3c1   : > { %s3372_s9 = sshll.u32 %s3561_s6, 4  ;;  %s3373_s9 = int_to_ptr.vmem [resolvable:$false] %s3372_s9 }
 0x3c2   : > { %s3374_s29 = scalar_lea.vmem %s3373_s9, 512  ;;  %p3375_p6 = scmp.lt.s32.totalorder %s4347_s24, %s3373_s9 }
 0x3c3   : > { %s2769_s30 = sshll.u32 %s4539_s0, 8  ;;  %p4542_p12 = scmp.ne.s32.totalorder %s4540_s7, 0 }
 0x3c4   : > { %s4344_s23 = scalar_lea.hbm %s4541_s4, %s2769_s30  ;;  %p3376_p11 = scmp.lt.s32.totalorder %s3374_s29, %s3368_s5 }
 0x3c5   : > { %p3370_p13 = pnand %p3369_p7, %p4542_p12 }
 0x3c6   : > { %p3377_p3 = por %p3376_p11, %p3375_p6 }
 0x3c7   : > { %p3371_p1 = pneg %p3370_p13 }
 0x3c9   : > { %p3378_p10 = pnand %p3377_p3, %p3371_p1 }
 0x3cb   : > { %3381 = shalt.err (!%p3378_p10)
}
 0x3cc   : > { %s3382_s19 = scalar_lea.hbm %s4344_s23, 256  ;;  %s3386_s30 = scalar_lea.hbm %s4541_s4, 512 }
 0x3cd   : > { %p3383_p2 = scmp.ne.s32.totalorder %s4344_s23, %s3382_s19  ;;  %p3387_p4 = scmp.lt.u32.totalorder %s4344_s23, %s4541_s4 }
 0x3ce   : > { %p3388_p0 = scmp.lt.u32.totalorder %s3386_s30, %s3382_s19  ;;  %p3390_p7 = scmp.lt.u32.totalorder %s3382_s19, %s4344_s23 }
 0x3cf   : > { %p3384_p8 = pnand %p3383_p2, %p4542_p12 }
 0x3d0   : > { %p3389_p9 = por %p3388_p0, %p3387_p4 }
 0x3d1   : > { %p3385_p5 = pneg %p3384_p8 }
 0x3d2   : > { %p3391_p13 = por %p3390_p7, %p3389_p9 }
 0x3d4   : > { %p3392_p1 = pnand %p3391_p13, %p3385_p5 }
 0x3d6   : > { %3395 = shalt.err (!%p3392_p1)
}
 0x3d7   : > { %s3562_s5 = smov 128   ;;  %s3563_s6 = smov 8  }
 0x3d8   : > { %2880 = dma.vmem_to_hbm [thread:$0]  (%p4542_p12), %s4347_s24, 256, %s4344_s23, %s2385_s15, %s3562_s5, %s3562_s5, %s3563_s6  }
 0x3d9 PF: > { %s4543_s9 = sld [smem:[#allocation25_spill]]  ;;  %s4544_s29 = sld [smem:[#allocation32_spill]] }
 0x3da   : > { %p2911_p6 = scmp.ge.s32.totalorder %s3534_s22, 2 }
 0x3df   : > { %s2415_s27 = sand.u32 1, %s4543_s9   ;;  %p4545_p11 = scmp.ne.s32.totalorder %s4544_s29, 0 }
 0x3e0   : > { %s2416_s19 = scalar_lea.sflag [#allocation8], %s2415_s27 }
 0x3e1   : > { %p2903_p3 = pnand %p2911_p6, %p4545_p11 }
 0x3e3   : > { %3477 = dma.done.wait (!%p2903_p3), %s2416_s19, 256  }
 0x3e4   : > { %3479 = vsyncadd (!%p2903_p3), %s2416_s19, 4294967040  ;;  %s32_s22 = sadd.s32 1, %s3534_s22   ;;  %s4547_s15 = sld [smem:[#allocation26_spill]] }
 0x3e5   : > { %p4378_p10 = scmp.ge.s32.totalorder %s32_s22, 14   ;;  %s4548_s28 = smov %s3909_s12 }
 0x3e6   : > { %s4549_s7 = sld [smem:[#allocation33_spill]]  ;;  %s4550_s23 = smov %s4568_s16 }
 0x3e7   : > { %s4551_s30 = smov %s3486_s10  ;;  %s4552_s10 = smov %s3490_s11 }
 0x3e8   : > { %s4553_s11 = smov %s3961_s3  ;;  %s4554_s12 = smov %s3498_s13 }
 0x3e9   : > { %s4555_s13 = smov %s3502_s14  ;;  %s4556_s14 = smov %s3912_s26 }
 0x3ea   : > { %s4557_s16 = smov %s3514_s17  ;;  %s4558_s17 = smov %s4548_s28 }
 0x3eb   : > { %s4559_s18 = smov %s3526_s20  ;;  %s4560_s19 = smov %s3530_s21 }
 0x3ec   : > { %s4561_s20 = smov %s4549_s7  ;;  %s4562_s21 = smov %s4550_s23 }
 0x3ed   :  { %31 = sbr.rel (!%p4378_p10) target bundleno = 25 (0x19), region = 160 }
 0x3f4   :  { %2421 = vsyncpa [#allocation7], 1 }
 0x3f5   :  { %2423 = vsyncpa [#allocation7 + $0x1], 1 }
 0x3f6   :  { %2424 = vsyncpa [#allocation10], 1 }
 0x3f7   :  { %2426 = vsyncpa [#allocation10 + $0x1], 1 }
 0x3f8   :  { %2427 = vsyncpa [#allocation13], 1 }
 0x3f9   :  { %2429 = vsyncpa [#allocation13 + $0x1], 1 }
 0x3fa   :  { %2430 = vsyncpa [#allocation16], 1 }
 0x3fb   :  { %2431 = vsyncpa [#allocation8], 1 }
 0x3fc   :  { %2433 = vsyncpa [#allocation8 + $0x1], 1 }

</bundles_post_ra>
